<compile_context>
chip_gen: v5e
topology: v5e:2x2
jax: 0.10.0
libtpu: 0.0.40
codegen_flags: <defaults>
</compile_context>

<pallas_src>
import jax
import jax.numpy as jnp
from jax.experimental import pallas as pl
from jax.experimental.pallas import tpu as pltpu

IN_DIM = 1 * 28 * 28   # 784
H1 = 512
H2 = 256
OUT_DIM = 1
MAX_BATCH_TILE = 256   # fills the 256-wide MXU on v6e/v7x, 2x128 on v5e


def _leaky_relu(x, slope=0.2):
    return jnp.where(x > 0, x, slope * x)


def _round_up(n, m):
    return ((n + m - 1) // m) * m


def discriminator_kernel(x_ref, w1_ref, b1_ref, w2_ref, b2_ref, w3_ref, b3_ref,
                         o_ref):
    """Whole MLP for one batch tile.  All weights stay resident in VMEM."""
    x = x_ref[...]                                                   # (TB, 784) bf16

    # Layer 1: (TB,784) @ (784,512), bf16 MXU, f32 accumulate.
    h1 = jnp.dot(x, w1_ref[...], preferred_element_type=jnp.float32)
    h1 = _leaky_relu(h1 + b1_ref[...])                               # (TB, 512) f32

    # Layer 2: (TB,512) @ (512,256), bf16 MXU, f32 accumulate.
    h2 = jnp.dot(h1.astype(jnp.bfloat16), w2_ref[...],
                 preferred_element_type=jnp.float32)
    h2 = _leaky_relu(h2 + b2_ref[...])                               # (TB, 256) f32

    # Layer 3 (out_features = 1): VPU multiply + lane reduction instead of a
    # wasteful 1-column MXU pass.
    w3_row = w3_ref[...].astype(jnp.float32)                         # (1, 256)
    z = jnp.sum(h2 * w3_row, axis=-1, keepdims=True) + b3_ref[...]   # (TB, 1)

    o_ref[...] = jax.nn.sigmoid(z).astype(o_ref.dtype)


@jax.jit
def discriminator_forward(img, params):
    """img: (B, 1, 28, 28) float32 NCHW.  Returns (B, 1) float32 in (0, 1)."""
    w1, b1, w2, b2, w3, b3 = params
    B = img.shape[0]
    x = img.reshape(B, -1)                       # == img.view(B, -1)

    # bf16 for everything that feeds the MXU / the lane reduction.
    x = x.astype(jnp.bfloat16)
    w1b = w1.astype(jnp.bfloat16)                # (784, 512)
    w2b = w2.astype(jnp.bfloat16)                # (512, 256)
    w3_row = w3.astype(jnp.bfloat16).reshape(1, H2)   # (1, 256) row layout
    b3r = b3.reshape(1, OUT_DIM)

    # Batch tile: as large as 256 (MXU-shaped), but never larger than the
    # (8-rounded) batch so tiny batches still compile with full-extent blocks.
    bp8 = _round_up(B, 8)
    tile = min(MAX_BATCH_TILE, bp8)
    Bp = _round_up(B, tile)
    if Bp != B:
        x = jnp.pad(x, ((0, Bp - B), (0, 0)))

    grid = (Bp // tile,)
    full = lambda i: (0, 0)  # weights / biases: same full block every step

    out = pl.pallas_call(
        discriminator_kernel,
        out_shape=jax.ShapeDtypeStruct((Bp, OUT_DIM), jnp.float32),
        grid_spec=pltpu.PrefetchScalarGridSpec(
            num_scalar_prefetch=0,
            grid=grid,
            in_specs=[
                pl.BlockSpec((tile, IN_DIM), lambda i: (i, 0)),
                pl.BlockSpec((IN_DIM, H1), full),
                pl.BlockSpec((1, H1), full),
                pl.BlockSpec((H1, H2), full),
                pl.BlockSpec((1, H2), full),
                pl.BlockSpec((1, H2), full),          # w3 as (1, 256) row
                pl.BlockSpec((1, OUT_DIM), full),
            ],
            out_specs=pl.BlockSpec((tile, OUT_DIM), lambda i: (i, 0)),
        ),
        compiler_params=pltpu.CompilerParams(
            dimension_semantics=("parallel",)),
    )(x, w1b, b1, w2b, b2, w3_row, b3r)

    return out[:B]


def init_params(key):
    """Deterministic init matching nn.Linear's U(-1/sqrt(fan_in), 1/sqrt(fan_in)).
    Weights are stored (in_features, out_features) for the kernel."""
    ks = jax.random.split(key, 6)

    def linear(kw, kb, fan_in, fan_out):
        bound = 1.0 / jnp.sqrt(fan_in)
        w = jax.random.uniform(kw, (fan_in, fan_out), jnp.float32,
                               minval=-bound, maxval=bound)
        b = jax.random.uniform(kb, (1, fan_out), jnp.float32,
                               minval=-bound, maxval=bound)
        return w, b

    w1, b1 = linear(ks[0], ks[1], IN_DIM, H1)
    w2, b2 = linear(ks[2], ks[3], H1, H2)
    w3, b3 = linear(ks[4], ks[5], H2, OUT_DIM)
    return (w1, b1, w2, b2, w3, b3)


def reference_forward(img, params):
    """Pure-JAX reference mirroring the kernel's bf16-matmul / f32-accumulate
    numerics (same math as the PyTorch forward, just reduced-precision dots)."""
    w1, b1, w2, b2, w3, b3 = params
    x = img.reshape(img.shape[0], -1).astype(jnp.bfloat16)
    h1 = _leaky_relu(jnp.dot(x, w1.astype(jnp.bfloat16),
                             preferred_element_type=jnp.float32) + b1)
    h2 = _leaky_relu(jnp.dot(h1.astype(jnp.bfloat16), w2.astype(jnp.bfloat16),
                             preferred_element_type=jnp.float32) + b2)
    w3_row = w3.astype(jnp.bfloat16).astype(jnp.float32).reshape(1, H2)
    z = jnp.sum(h2 * w3_row, axis=-1, keepdims=True) + b3.reshape(1, OUT_DIM)
    return jax.nn.sigmoid(z)


if __name__ == "__main__":
    key = jax.random.PRNGKey(0)
    k_param, k_img_a, k_img_b = jax.random.split(key, 3)

    params = init_params(k_param)

    # Small batch (single full-extent tile path).
    img_small = jax.random.normal(k_img_a, (2, 1, 28, 28), dtype=jnp.float32)
    out_small = jax.block_until_ready(discriminator_forward(img_small, params))
    ref_small = reference_forward(img_small, params)
    assert out_small.shape == (2, 1), out_small.shape
    assert jnp.allclose(out_small, ref_small, atol=1e-3, rtol=1e-3), \
        f"max err {jnp.max(jnp.abs(out_small - ref_small))}"

    # Larger batch exercising the 256-row tile / multi-step grid path.
    img_big = jax.random.normal(k_img_b, (300, 1, 28, 28), dtype=jnp.float32)
    out_big = jax.block_until_ready(discriminator_forward(img_big, params))
    ref_big = reference_forward(img_big, params)
    assert out_big.shape == (300, 1), out_big.shape
    assert jnp.allclose(out_big, ref_big, atol=1e-3, rtol=1e-3), \
        f"max err {jnp.max(jnp.abs(out_big - ref_big))}"

    print("KERNEL_OK")
</pallas_src>

<mosaic_0001>
module attributes {stable_mosaic.version = 11 : i64} {
  func.func @discriminator_kernel(%arg0: i32, %arg1: memref<8x784xbf16, #tpu.memory_space<vmem>>, %arg2: memref<784x512xbf16, #tpu.memory_space<vmem>>, %arg3: memref<1x512xf32, #tpu.memory_space<vmem>>, %arg4: memref<512x256xbf16, #tpu.memory_space<vmem>>, %arg5: memref<1x256xf32, #tpu.memory_space<vmem>>, %arg6: memref<1x256xbf16, #tpu.memory_space<vmem>>, %arg7: memref<1x1xf32, #tpu.memory_space<vmem>>, %arg8: memref<8x1xf32, #tpu.memory_space<vmem>>) attributes {dimension_semantics = [#tpu.dimension_semantics<parallel>], iteration_bounds = array<i64: 1>, scalar_prefetch = 0 : i64, scratch_operands = 0 : i64, tpu.core_type = #tpu.core_type<tc>, window_params = [{transform_indices = @transform_0, window_bounds = array<i64: 8, 784>}, {pipeline_mode = #tpu.pipeline_mode<synchronous>, transform_indices = @transform_1, window_bounds = array<i64: 784, 512>}, {pipeline_mode = #tpu.pipeline_mode<synchronous>, transform_indices = @transform_2, window_bounds = array<i64: 1, 512>}, {pipeline_mode = #tpu.pipeline_mode<synchronous>, transform_indices = @transform_3, window_bounds = array<i64: 512, 256>}, {pipeline_mode = #tpu.pipeline_mode<synchronous>, transform_indices = @transform_4, window_bounds = array<i64: 1, 256>}, {pipeline_mode = #tpu.pipeline_mode<synchronous>, transform_indices = @transform_5, window_bounds = array<i64: 1, 256>}, {pipeline_mode = #tpu.pipeline_mode<synchronous>, transform_indices = @transform_6, window_bounds = array<i64: 1, 1>}, {transform_indices = @transform_7, window_bounds = array<i64: 8, 1>}]} {
    %c0 = arith.constant 0 : index
    %c0_0 = arith.constant 0 : index
    %0 = vector.load %arg1[%c0, %c0_0] : memref<8x784xbf16, #tpu.memory_space<vmem>>, vector<8x784xbf16>
    %c0_1 = arith.constant 0 : index
    %c0_2 = arith.constant 0 : index
    %1 = vector.load %arg2[%c0_1, %c0_2] : memref<784x512xbf16, #tpu.memory_space<vmem>>, vector<784x512xbf16>
    %cst = arith.constant dense<0.000000e+00> : vector<8x512xf32>
    %2 = tpu.matmul %0, %1, %cst {dimension_numbers = #tpu.dot_dimension_numbers<[1], [0], [0], [1], [0, 0, 1, 1], [], []>} : vector<8x784xbf16>, vector<784x512xbf16>, vector<8x512xf32> -> vector<8x512xf32>
    %c0_3 = arith.constant 0 : index
    %c0_4 = arith.constant 0 : index
    %3 = vector.load %arg3[%c0_3, %c0_4] : memref<1x512xf32, #tpu.memory_space<vmem>>, vector<1x512xf32>
    %4 = vector.broadcast %3 : vector<1x512xf32> to vector<8x512xf32>
    %5 = arith.addf %2, %4 : vector<8x512xf32>
    %cst_5 = arith.constant 0.000000e+00 : f32
    %6 = vector.broadcast %cst_5 : f32 to vector<8x512xf32>
    %7 = arith.cmpf ogt, %5, %6 : vector<8x512xf32>
    %cst_6 = arith.constant 2.000000e-01 : f32
    %8 = vector.broadcast %cst_6 : f32 to vector<8x512xf32>
    %9 = arith.mulf %8, %5 : vector<8x512xf32>
    %10 = arith.select %7, %5, %9 : vector<8x512xi1>, vector<8x512xf32>
    %11 = arith.truncf %10 : vector<8x512xf32> to vector<8x512xbf16>
    %c0_7 = arith.constant 0 : index
    %c0_8 = arith.constant 0 : index
    %12 = vector.load %arg4[%c0_7, %c0_8] : memref<512x256xbf16, #tpu.memory_space<vmem>>, vector<512x256xbf16>
    %cst_9 = arith.constant dense<0.000000e+00> : vector<8x256xf32>
    %13 = tpu.matmul %11, %12, %cst_9 {dimension_numbers = #tpu.dot_dimension_numbers<[1], [0], [0], [1], [0, 0, 1, 1], [], []>} : vector<8x512xbf16>, vector<512x256xbf16>, vector<8x256xf32> -> vector<8x256xf32>
    %c0_10 = arith.constant 0 : index
    %c0_11 = arith.constant 0 : index
    %14 = vector.load %arg5[%c0_10, %c0_11] : memref<1x256xf32, #tpu.memory_space<vmem>>, vector<1x256xf32>
    %15 = vector.broadcast %14 : vector<1x256xf32> to vector<8x256xf32>
    %16 = arith.addf %13, %15 : vector<8x256xf32>
    %cst_12 = arith.constant 0.000000e+00 : f32
    %17 = vector.broadcast %cst_12 : f32 to vector<8x256xf32>
    %18 = arith.cmpf ogt, %16, %17 : vector<8x256xf32>
    %cst_13 = arith.constant 2.000000e-01 : f32
    %19 = vector.broadcast %cst_13 : f32 to vector<8x256xf32>
    %20 = arith.mulf %19, %16 : vector<8x256xf32>
    %21 = arith.select %18, %16, %20 : vector<8x256xi1>, vector<8x256xf32>
    %c0_14 = arith.constant 0 : index
    %c0_15 = arith.constant 0 : index
    %22 = vector.load %arg6[%c0_14, %c0_15] : memref<1x256xbf16, #tpu.memory_space<vmem>>, vector<1x256xbf16>
    %23 = arith.extf %22 : vector<1x256xbf16> to vector<1x256xf32>
    %24 = vector.broadcast %23 : vector<1x256xf32> to vector<8x256xf32>
    %25 = arith.mulf %21, %24 : vector<8x256xf32>
    %cst_16 = arith.constant dense<0.000000e+00> : vector<8xf32>
    %26 = vector.multi_reduction <add>, %25, %cst_16 [1] : vector<8x256xf32> to vector<8xf32>
    %27 = vector.shape_cast %26 : vector<8xf32> to vector<8x1xf32>
    %c0_17 = arith.constant 0 : index
    %c0_18 = arith.constant 0 : index
    %28 = vector.load %arg7[%c0_17, %c0_18] : memref<1x1xf32, #tpu.memory_space<vmem>>, vector<1x1xf32>
    %29 = vector.broadcast %28 : vector<1x1xf32> to vector<8x1xf32>
    %30 = arith.addf %27, %29 : vector<8x1xf32>
    %31 = arith.negf %30 : vector<8x1xf32>
    %32 = math.exp %31 : vector<8x1xf32>
    %cst_19 = arith.constant 1.000000e+00 : f32
    %33 = vector.broadcast %cst_19 : f32 to vector<8x1xf32>
    %34 = arith.addf %33, %32 : vector<8x1xf32>
    %35 = arith.divf %33, %34 : vector<8x1xf32>
    %c0_20 = arith.constant 0 : index
    %c0_21 = arith.constant 0 : index
    %36 = vector.load %arg8[%c0_20, %c0_21] : memref<8x1xf32, #tpu.memory_space<vmem>>, vector<8x1xf32>
    tpu.vector_store %arg8[%c0_20, %c0_21], %35 {strides = array<i32>} : memref<8x1xf32, #tpu.memory_space<vmem>>, vector<8x1xf32>,
    return
  }
  func.func @transform_0(%arg0: i32) -> (i32, i32) {
    %c0_i32 = arith.constant 0 : i32
    %c0_i32_0 = arith.constant 0 : i32
    return %arg0, %c0_i32 : i32, i32
  }
  func.func @transform_1(%arg0: i32) -> (i32, i32) {
    %c0_i32 = arith.constant 0 : i32
    %c0_i32_0 = arith.constant 0 : i32
    %c0_i32_1 = arith.constant 0 : i32
    return %c0_i32, %c0_i32_0 : i32, i32
  }
  func.func @transform_2(%arg0: i32) -> (i32, i32) {
    %c0_i32 = arith.constant 0 : i32
    %c0_i32_0 = arith.constant 0 : i32
    %c0_i32_1 = arith.constant 0 : i32
    return %c0_i32, %c0_i32_0 : i32, i32
  }
  func.func @transform_3(%arg0: i32) -> (i32, i32) {
    %c0_i32 = arith.constant 0 : i32
    %c0_i32_0 = arith.constant 0 : i32
    %c0_i32_1 = arith.constant 0 : i32
    return %c0_i32, %c0_i32_0 : i32, i32
  }
  func.func @transform_4(%arg0: i32) -> (i32, i32) {
    %c0_i32 = arith.constant 0 : i32
    %c0_i32_0 = arith.constant 0 : i32
    %c0_i32_1 = arith.constant 0 : i32
    return %c0_i32, %c0_i32_0 : i32, i32
  }
  func.func @transform_5(%arg0: i32) -> (i32, i32) {
    %c0_i32 = arith.constant 0 : i32
    %c0_i32_0 = arith.constant 0 : i32
    %c0_i32_1 = arith.constant 0 : i32
    return %c0_i32, %c0_i32_0 : i32, i32
  }
  func.func @transform_6(%arg0: i32) -> (i32, i32) {
    %c0_i32 = arith.constant 0 : i32
    %c0_i32_0 = arith.constant 0 : i32
    %c0_i32_1 = arith.constant 0 : i32
    return %c0_i32, %c0_i32_0 : i32, i32
  }
  func.func @transform_7(%arg0: i32) -> (i32, i32) {
    %c0_i32 = arith.constant 0 : i32
    %c0_i32_0 = arith.constant 0 : i32
    return %arg0, %c0_i32 : i32, i32
  }
}

</mosaic_0001>

<bundles_post_ra>
// kernel: discriminator_forward.1
= control target key start
LH: loop header
LB: loop body
LE: loop exit
PB: predicated region body
PF: predicated region fallthrough
CT: control target
= control target key end

     0   :  { %vm1243_vm0 = vcmask 130048   ;;  %vm2165_vm10 = vcmask 7168   ;;  %s5185_s1 = inlined_call_operand.vmem [shape: bf16[784,512], index: 1, kind: input, shape index: {}]   ;;  %s5186_s0 = inlined_call_operand.vmem [shape: bf16[8,784], index: 0, kind: input, shape index: {}]   ;;  %s5187_s2 = inlined_call_operand.vmem [shape: f32[1,512], index: 2, kind: input, shape index: {}]   ;;  %s5188_s3 = inlined_call_operand.vmem [shape: bf16[512,256], index: 3, kind: input, shape index: {}]   ;;  %s5189_s4 = inlined_call_operand.vmem [shape: f32[1,256], index: 4, kind: input, shape index: {}]   ;;  %s5190_s6 = inlined_call_operand.<no memory space> [shape: f32[1,1], index: 6, kind: input, shape index: {}]   ;;  %s5191_s5 = inlined_call_operand.vmem [shape: bf16[1,256], index: 5, kind: input, shape index: {}]   ;;  %s5192_s7 = inlined_call_operand.vmem [shape: f32[8,1], index: 7, kind: output, shape index: {}]  }
   0x1   :  { %v2285_v0 = vld [vmem:[%s5185_s1 + $0xe0] sm:$0xf]  ;;  %v3246_v1 = vld [vmem:[%s5185_s1 + $0xec] sm:$0xf0] }
   0x2   :  { %v2413_v2 = vld [vmem:[%s5185_s1 + $0x1e0] sm:$0xf]  ;;  %v2286_v3 = vor.u32 %v3246_v1, %v2285_v0  ;;  %v3278_v4 = vld [vmem:[%s5185_s1 + $0x1ec] sm:$0xf0] }
   0x3   :  { %v2541_v5 = vld [vmem:[%s5185_s1 + $0x2e0] sm:$0xf]  ;;  %v3310_v6 = vld [vmem:[%s5185_s1 + $0x2ec] sm:$0xf0]  ;;  %v2414_v7 = vor.u32 %v3278_v4, %v2413_v2 }
   0x4   :  { %v2542_v8 = vor.u32 %v3310_v6, %v2541_v5  ;;  %v2669_v9 = vld [vmem:[%s5185_s1 + $0x3e0] sm:$0xf]  ;;  %v3342_v10 = vld [vmem:[%s5185_s1 + $0x3ec] sm:$0xf0]  ;;  %1247 = vmatpush.bf16.msra.mxu0 %v2286_v3 }
   0x5   :  { %v2269_v11 = vld [vmem:[%s5185_s1 + $0xc0] sm:$0xf]  ;;  %v2670_v12 = vor.u32 %v3342_v10, %v2669_v9  ;;  %v3242_v13 = vld [vmem:[%s5185_s1 + $0xcc] sm:$0xf0]  ;;  %1260 = vmatpush.bf16.msra.mxu1 %v2414_v7 }
   0x6   :  { %v2397_v14 = vld [vmem:[%s5185_s1 + $0x1c0] sm:$0xf]  ;;  %v3274_v15 = vld [vmem:[%s5185_s1 + $0x1cc] sm:$0xf0]  ;;  %1273 = vmatpush.bf16.msra.mxu2 %v2542_v8  ;;  %v2270_v16 = vor.u32 %v3242_v13, %v2269_v11 }
   0x7   :  { %v2398_v17 = vor.u32 %v3274_v15, %v2397_v14  ;;  %v2525_v18 = vld [vmem:[%s5185_s1 + $0x2c0] sm:$0xf]  ;;  %v3306_v19 = vld [vmem:[%s5185_s1 + $0x2cc] sm:$0xf0]  ;;  %1286 = vmatpush.bf16.msra.mxu3 %v2670_v12 }
   0x8   :  { %v2653_v20 = vld [vmem:[%s5185_s1 + $0x3c0] sm:$0xf]  ;;  %v2526_v21 = vor.u32 %v3306_v19, %v2525_v18  ;;  %v3338_v22 = vld [vmem:[%s5185_s1 + $0x3cc] sm:$0xf0]  ;;  %1248 = vmatpush.bf16.msra.mxu0 %v2270_v16 }
   0x9   :  { %v2253_v23 = vld [vmem:[%s5185_s1 + $0xa0] sm:$0xf]  ;;  %v3238_v24 = vld [vmem:[%s5185_s1 + $0xac] sm:$0xf0]  ;;  %v2654_v25 = vor.u32 %v3338_v22, %v2653_v20  ;;  %1261 = vmatpush.bf16.msra.mxu1 %v2398_v17 }
   0xa   :  { %v2381_v26 = vld [vmem:[%s5185_s1 + $0x1a0] sm:$0xf]  ;;  %v3270_v27 = vld [vmem:[%s5185_s1 + $0x1ac] sm:$0xf0]  ;;  %v2254_v29 = vor.u32 %v3238_v24, %v2253_v23  ;;  %1274 = vmatpush.bf16.msra.mxu2 %v2526_v21 }
   0xb   :  { %v2509_v28 = vld [vmem:[%s5185_s1 + $0x2a0] sm:$0xf]  ;;  %v3302_v30 = vld [vmem:[%s5185_s1 + $0x2ac] sm:$0xf0]  ;;  %v2382_v33 = vor.u32 %v3270_v27, %v2381_v26  ;;  %1287 = vmatpush.bf16.msra.mxu3 %v2654_v25  ;;  %v30_v25 = vld [vmem:[%s5186_s0 + $0x8] sm:$0xff] }
   0xc   :  { %v2637_v31 = vld [vmem:[%s5185_s1 + $0x3a0] sm:$0xf]  ;;  %v3334_v32 = vld [vmem:[%s5185_s1 + $0x3ac] sm:$0xf0]  ;;  %v2510_v34 = vor.u32 %v3302_v30, %v2509_v28  ;;  %1249 = vmatpush.bf16.msra.mxu0 %v2254_v29 }
   0xd   :  { %v2237_v35 = vld [vmem:[%s5185_s1 + $0x80] sm:$0xf]  ;;  %v3234_v36 = vld [vmem:[%s5185_s1 + $0x8c] sm:$0xf0]  ;;  %v2638_v38 = vor.u32 %v3334_v32, %v2637_v31  ;;  %1262 = vmatpush.bf16.msra.mxu1 %v2382_v33 }
   0xe   :  { %v2365_v37 = vld [vmem:[%s5185_s1 + $0x180] sm:$0xf]  ;;  %v3266_v39 = vld [vmem:[%s5185_s1 + $0x18c] sm:$0xf0]  ;;  %v2238_v44 = vor.u32 %v3234_v36, %v2237_v35  ;;  %1275 = vmatpush.bf16.msra.mxu2 %v2510_v34  ;;  %v3244_v34 = vld [vmem:[%s5185_s1 + $0xe4] sm:$0xf]  ;;  %v245_v36 = vunpack.c.l.b16 %v30_v25 }
   0xf   :  { %v2493_v40 = vld [vmem:[%s5185_s1 + $0x280] sm:$0xf]  ;;  %v3298_v41 = vld [vmem:[%s5185_s1 + $0x28c] sm:$0xf0]  ;;  %v2366_v45 = vor.u32 %v3266_v39, %v2365_v37  ;;  %1288 = vmatpush.bf16.msra.mxu3 %v2638_v38  ;;  %v2287_v35 = vld [vmem:[%s5185_s1 + $0xf0] sm:$0xf0] }
  0x10   :  { %v2621_v42 = vld [vmem:[%s5185_s1 + $0x380] sm:$0xf]  ;;  %v3330_v43 = vld [vmem:[%s5185_s1 + $0x38c] sm:$0xf0]  ;;  %v2494_v46 = vor.u32 %v3298_v41, %v2493_v40  ;;  %1250 = vmatpush.bf16.msra.mxu0 %v2238_v44 }
  0x11   :  { %v2221_v47 = vld [vmem:[%s5185_s1 + $0x60] sm:$0xf]  ;;  %v3230_v48 = vld [vmem:[%s5185_s1 + $0x6c] sm:$0xf0]  ;;  %v2622_v50 = vor.u32 %v3330_v43, %v2621_v42  ;;  %1263 = vmatpush.bf16.msra.mxu1 %v2366_v45  ;;  %v246_v42 = vunpack.c.h.b16 %v30_v25  ;;  %v3264_v25 = vld [vmem:[%s5185_s1 + $0x184] sm:$0xf] }
  0x12   :  { %v2349_v49 = vld [vmem:[%s5185_s1 + $0x160] sm:$0xf]  ;;  %v3262_v51 = vld [vmem:[%s5185_s1 + $0x16c] sm:$0xf0]  ;;  %v2222_v56 = vor.u32 %v3230_v48, %v2221_v47  ;;  %1276 = vmatpush.bf16.msra.mxu2 %v2494_v46  ;;  %v3276_v46 = vld [vmem:[%s5185_s1 + $0x1e4] sm:$0xf] }
  0x13   :  { %v2477_v52 = vld [vmem:[%s5185_s1 + $0x260] sm:$0xf]  ;;  %v3294_v53 = vld [vmem:[%s5185_s1 + $0x26c] sm:$0xf0]  ;;  %v2350_v57 = vor.u32 %v3262_v51, %v2349_v49  ;;  %1289 = vmatpush.bf16.msra.mxu3 %v2622_v50  ;;  %v2415_v47 = vld [vmem:[%s5185_s1 + $0x1f0] sm:$0xf0]  ;;  %v2290_v49 = vor.u32 %v3244_v34, %v2287_v35 }
  0x14   :  { %v2605_v54 = vld [vmem:[%s5185_s1 + $0x360] sm:$0xf]  ;;  %v3326_v55 = vld [vmem:[%s5185_s1 + $0x36c] sm:$0xf0]  ;;  %v2478_v58 = vor.u32 %v3294_v53, %v2477_v52  ;;  %1251 = vmatpush.bf16.msra.mxu0 %v2222_v56  ;;  %v3758_v53 = vpack.c.b16 %v245_v36, %v245_v36  ;;  %v2271_v56 = vld [vmem:[%s5185_s1 + $0xd0] sm:$0xf0] }
  0x15   :  { %v2205_v59 = vld [vmem:[%s5185_s1 + $0x40] sm:$0xf]  ;;  %v3226_v60 = vld [vmem:[%s5185_s1 + $0x4c] sm:$0xf0]  ;;  %v2606_v62 = vor.u32 %v3326_v55, %v2605_v54  ;;  %1264 = vmatpush.bf16.msra.mxu1 %v2350_v57  ;;  %v3240_v55 = vld [vmem:[%s5185_s1 + $0xc4] sm:$0xf] }
  0x16   :  { %v2333_v61 = vld [vmem:[%s5185_s1 + $0x140] sm:$0xf]  ;;  %v3258_v63 = vld [vmem:[%s5185_s1 + $0x14c] sm:$0xf0]  ;;  %v2206_v4 = vor.u32 %v3226_v60, %v2205_v59  ;;  %1277 = vmatpush.bf16.msra.mxu2 %v2478_v58  ;;  %v3771_v60 = vpack.c.b16 %v246_v42, %v246_v42  ;;  %v2223_v34 = vld [vmem:[%s5185_s1 + $0x70] sm:$0xf0] }
  0x17   :  { %v2461_v0 = vld [vmem:[%s5185_s1 + $0x240] sm:$0xf]  ;;  %v3290_v1 = vld [vmem:[%s5185_s1 + $0x24c] sm:$0xf0]  ;;  %v2334_v5 = vor.u32 %v3258_v63, %v2333_v61  ;;  %1290 = vmatpush.bf16.msra.mxu3 %v2606_v62  ;;  %v2418_v61 = vor.u32 %v3276_v46, %v2415_v47  ;;  %v3272_v63 = vld [vmem:[%s5185_s1 + $0x1c4] sm:$0xf] }
  0x18   :  { %v2589_v2 = vld [vmem:[%s5185_s1 + $0x340] sm:$0xf]  ;;  %v3322_v3 = vld [vmem:[%s5185_s1 + $0x34c] sm:$0xf0]  ;;  %v2462_v6 = vor.u32 %v3290_v1, %v2461_v0  ;;  %1252 = vmatpush.bf16.msra.mxu0 %v2206_v4  ;;  %v2399_v0 = vld [vmem:[%s5185_s1 + $0x1d0] sm:$0xf0] }
  0x19   :  { %v2189_v7 = vld [vmem:[%s5185_s1 + $0x20] sm:$0xf]  ;;  %v3222_v8 = vld [vmem:[%s5185_s1 + $0x2c] sm:$0xf0]  ;;  %v2590_v10 = vor.u32 %v3322_v3, %v2589_v2  ;;  %1265 = vmatpush.bf16.msra.mxu1 %v2334_v5  ;;  %v2274_v2 = vor.u32 %v3240_v55, %v2271_v56  ;;  %v3224_v46 = vld [vmem:[%s5185_s1 + $0x44] sm:$0xf] }
  0x1a   :  { %v2317_v9 = vld [vmem:[%s5185_s1 + $0x120] sm:$0xf]  ;;  %v3254_v11 = vld [vmem:[%s5185_s1 + $0x12c] sm:$0xf0]  ;;  %v2190_v17 = vor.u32 %v3222_v8, %v2189_v7  ;;  %1278 = vmatpush.bf16.msra.mxu2 %v2462_v6  ;;  %v3236_v7 = vld [vmem:[%s5185_s1 + $0xa4] sm:$0xf] }
  0x1b   :  { %v2445_v12 = vld [vmem:[%s5185_s1 + $0x220] sm:$0xf]  ;;  %v3286_v13 = vld [vmem:[%s5185_s1 + $0x22c] sm:$0xf0]  ;;  %v2318_v21 = vor.u32 %v3254_v11, %v2317_v9  ;;  %1291 = vmatpush.bf16.msra.mxu3 %v2590_v10  ;;  %v2255_v8 = vld [vmem:[%s5185_s1 + $0xb0] sm:$0xf0]  ;;  %v2402_v10 = vor.u32 %v3272_v63, %v2399_v0 }
  0x1c   :  { %v2573_v14 = vld [vmem:[%s5185_s1 + $0x320] sm:$0xf]  ;;  %v3318_v15 = vld [vmem:[%s5185_s1 + $0x32c] sm:$0xf0]  ;;  %v2446_v22 = vor.u32 %v3286_v13, %v2445_v12  ;;  %1253 = vmatpush.bf16.msra.mxu0 %v2190_v17  ;;  %v3268_v12 = vld [vmem:[%s5185_s1 + $0x1a4] sm:$0xf] }
  0x1d   :  { %v2173_v16 = vld [vmem:[%s5185_s1] sm:$0xf]  ;;  %v3218_v18 = vld [vmem:[%s5185_s1 + $0xc] sm:$0xf0]  ;;  %v2574_v26 = vor.u32 %v3318_v15, %v2573_v14  ;;  %1266 = vmatpush.bf16.msra.mxu1 %v2318_v21  ;;  %v2383_v13 = vld [vmem:[%s5185_s1 + $0x1b0] sm:$0xf0]  ;;  %v2258_v15 = vor.u32 %v3236_v7, %v2255_v8 }
  0x1e   :  { %v2301_v19 = vld [vmem:[%s5185_s1 + $0x100] sm:$0xf]  ;;  %v3250_v20 = vld [vmem:[%s5185_s1 + $0x10c] sm:$0xf0]  ;;  %v2174_v33 = vor.u32 %v3218_v18, %v2173_v16  ;;  %1279 = vmatpush.bf16.msra.mxu2 %v2446_v22  ;;  %v2239_v21 = vld [vmem:[%s5185_s1 + $0x90] sm:$0xf0] }
  0x1f   :  { %v2429_v23 = vld [vmem:[%s5185_s1 + $0x200] sm:$0xf]  ;;  %v3282_v24 = vld [vmem:[%s5185_s1 + $0x20c] sm:$0xf0]  ;;  %v2302_v38 = vor.u32 %v3250_v20, %v2301_v19  ;;  %1292 = vmatpush.bf16.msra.mxu3 %v2574_v26  ;;  %v3232_v20 = vld [vmem:[%s5185_s1 + $0x84] sm:$0xf] }
  0x20   :  { %v2557_v27 = vld [vmem:[%s5185_s1 + $0x300] sm:$0xf]  ;;  %v3314_v28 = vld [vmem:[%s5185_s1 + $0x30c] sm:$0xf0]  ;;  %v2430_v39 = vor.u32 %v3282_v24, %v2429_v23  ;;  %1254 = vmatpush.bf16.msra.mxu0 %v2174_v33  ;;  %v32_v22 = vld [vmem:[%s5186_s0 + $0x18] sm:$0xf]  ;;  %v2386_v23 = vor.u32 %v3268_v12, %v2383_v13 }
  0x21   :  { %v2797_v29 = vld [vmem:[%s5185_s1 + $0x4e0] sm:$0xf]  ;;  %v3374_v30 = vld [vmem:[%s5185_s1 + $0x4ec] sm:$0xf0]  ;;  %v2558_v43 = vor.u32 %v3314_v28, %v2557_v27  ;;  %1267 = vmatpush.bf16.msra.mxu1 %v2302_v38  ;;  %v2367_v26 = vld [vmem:[%s5185_s1 + $0x190] sm:$0xf0]  ;;  %v2242_v28 = vor.u32 %v3232_v20, %v2239_v21  ;;  %v249_v35 = vunpack.c.l.b16 %v32_v22 }
  0x22   :  { %v2925_v31 = vld [vmem:[%s5185_s1 + $0x5e0] sm:$0xf]  ;;  %v3406_v32 = vld [vmem:[%s5185_s1 + $0x5ec] sm:$0xf0]  ;;  %v2798_v44 = vor.u32 %v3374_v30, %v2797_v29  ;;  %1280 = vmatpush.bf16.msra.mxu2 %v2430_v39  ;;  %v3228_v33 = vld [vmem:[%s5185_s1 + $0x64] sm:$0xf]  ;;  %v2370_v36 = vor.u32 %v3264_v25, %v2367_v26 }
  0x23   :  { %v29_v37 = vld [vmem:[%s5186_s0] sm:$0xff]  ;;  %v3410_v45 = vld [vmem:[%s5185_s1 + $0x60c] sm:$0xf0]  ;;  %v2926_v48 = vor.u32 %v3406_v32, %v2925_v31  ;;  %1293 = vmatpush.bf16.msra.mxu3 %v2558_v43  ;;  %v2351_v39 = vld [vmem:[%s5185_s1 + $0x170] sm:$0xf0] }
  0x24   :  { %v2941_v40 = vld [vmem:[%s5185_s1 + $0x600] sm:$0xf]  ;;  %v243_v41 = vunpack.c.l.b16 %v29_v37  ;;  %v3370_v51 = vld [vmem:[%s5185_s1 + $0x4cc] sm:$0xf0]  ;;  %v244_v58 = vunpack.c.h.b16 %v29_v37  ;;  %1299 = vmatpush.bf16.msrb.mxu0 %v2798_v44  ;;  %v3260_v38 = vld [vmem:[%s5185_s1 + $0x164] sm:$0xf] }
  0x25   :  { %v2781_v50 = vld [vmem:[%s5185_s1 + $0x4c0] sm:$0xf]  ;;  %v3402_v54 = vld [vmem:[%s5185_s1 + $0x5cc] sm:$0xf0]  ;;  %v2942_v59 = vor.u32 %v3410_v45, %v2941_v40  ;;  %1312 = vmatpush.bf16.msrb.mxu1 %v2926_v48  ;;  %1281 = vmatmul.bf16.vlgmr.msra.gmra.mxu2 %v3758_v53  ;;  %v2207_v47 = vld [vmem:[%s5185_s1 + $0x50] sm:$0xf0]  ;;  %v3878_v48 = vpack.c.b16 %v249_v35, %v249_v35 }
  0x26   :  { %v2909_v52 = vld [vmem:[%s5185_s1 + $0x5c0] sm:$0xf]  ;;  %v3769_v57 = vpack.c.b16 %v243_v41, %v243_v41  ;;  %v2782_v62 = vor.u32 %v3370_v51, %v2781_v50  ;;  %v3366_v4 = vld [vmem:[%s5185_s1 + $0x4ac] sm:$0xf0]  ;;  %v3799_v9 = vpack.c.b16 %v244_v58, %v244_v58  ;;  %1294 = vmatmul.bf16.vlgmr.msra.gmra.mxu3 %v3771_v60  ;;  %v2226_v41 = vor.u32 %v3228_v33, %v2223_v34  ;;  %v3256_v51 = vld [vmem:[%s5185_s1 + $0x144] sm:$0xf] }
  0x27   :  { %1338 = vmatpush.bf16.msrb.mxu3 %v2290_v49  ;;  %v2910_v1 = vor.u32 %v3402_v54, %v2909_v52  ;;  %v2765_v3 = vld [vmem:[%s5185_s1 + $0x4a0] sm:$0xf]  ;;  %v3398_v6 = vld [vmem:[%s5185_s1 + $0x5ac] sm:$0xf0]  ;;  %1332 = vmatpush.bf16.msrb.mxu2 %v2942_v59  ;;  %v2354_v49 = vor.u32 %v3260_v38, %v2351_v39  ;;  %v2335_v52 = vld [vmem:[%s5185_s1 + $0x150] sm:$0xf0]  ;;  %v2210_v55 = vor.u32 %v3224_v46, %v2207_v47 }
  0x28   :  { %v2893_v5 = vld [vmem:[%s5185_s1 + $0x5a0] sm:$0xf]  ;;  %1255 = vmatmul.bf16.vlgmr.msra.gmra.mxu0 %v3769_v57  ;;  %v2766_v11 = vor.u32 %v3366_v4, %v2765_v3  ;;  %v3362_v17 = vld [vmem:[%s5185_s1 + $0x48c] sm:$0xf0]  ;;  %1268 = vmatmul.bf16.vlgmr.msra.gmra.mxu1 %v3799_v9  ;;  %v2191_v63 = vld [vmem:[%s5185_s1 + $0x30] sm:$0xf0] }
  0x29   :  { %1300 = vmatpush.bf16.msrb.mxu0 %v2782_v62  ;;  %1313 = vmatpush.bf16.msrb.mxu1 %v2910_v1  ;;  %v2894_v14 = vor.u32 %v3398_v6, %v2893_v5  ;;  %v2749_v16 = vld [vmem:[%s5185_s1 + $0x480] sm:$0xf]  ;;  %v3394_v19 = vld [vmem:[%s5185_s1 + $0x58c] sm:$0xf0]  ;;  %v3220_v62 = vld [vmem:[%s5185_s1 + $0x24] sm:$0xf]  ;;  %v2338_v1 = vor.u32 %v3256_v51, %v2335_v52 }
  0x2a   :  { %v2877_v18 = vld [vmem:[%s5185_s1 + $0x580] sm:$0xf]  ;;  %v2750_v24 = vor.u32 %v3362_v17, %v2749_v16  ;;  %v3358_v30 = vld [vmem:[%s5185_s1 + $0x46c] sm:$0xf0]  ;;  %v3252_v0 = vld [vmem:[%s5185_s1 + $0x124] sm:$0xf]  ;;  %v2194_v7 = vor.u32 %v3220_v62, %v2191_v63 }
  0x2b   :  { %1351 = vmatpush.bf16.msra.mxu2 %v2418_v61  ;;  %1339 = vmatpush.bf16.msrb.mxu3 %v2274_v2  ;;  %v2878_v27 = vor.u32 %v3394_v19, %v2877_v18  ;;  %v2733_v29 = vld [vmem:[%s5185_s1 + $0x460] sm:$0xf]  ;;  %v3390_v32 = vld [vmem:[%s5185_s1 + $0x56c] sm:$0xf0]  ;;  %v2319_v3 = vld [vmem:[%s5185_s1 + $0x130] sm:$0xf0] }
  0x2c   :  { %v2861_v31 = vld [vmem:[%s5185_s1 + $0x560] sm:$0xf]  ;;  %v2734_v37 = vor.u32 %v3358_v30, %v2733_v29  ;;  %v3354_v43 = vld [vmem:[%s5185_s1 + $0x44c] sm:$0xf0]  ;;  %v3216_v12 = vld [vmem:[%s5185_s1 + $0x4] sm:$0xf]  ;;  %v2322_v19 = vor.u32 %v3252_v0, %v2319_v3 }
  0x2d   :  { %1301 = vmatpush.bf16.msrb.mxu0 %v2766_v11  ;;  %1314 = vmatpush.bf16.msrb.mxu1 %v2894_v14  ;;  %v2862_v40 = vor.u32 %v3390_v32, %v2861_v31  ;;  %v2717_v42 = vld [vmem:[%s5185_s1 + $0x440] sm:$0xf]  ;;  %v3386_v45 = vld [vmem:[%s5185_s1 + $0x54c] sm:$0xf0]  ;;  %v2175_v13 = vld [vmem:[%s5185_s1 + $0x10] sm:$0xf0] }
  0x2e   :  { %v2845_v44 = vld [vmem:[%s5185_s1 + $0x540] sm:$0xf]  ;;  %v2718_v50 = vor.u32 %v3354_v43, %v2717_v42  ;;  %v3350_v58 = vld [vmem:[%s5185_s1 + $0x42c] sm:$0xf0]  ;;  %v3308_v14 = vld [vmem:[%s5185_s1 + $0x2e4] sm:$0xf]  ;;  %v2178_v25 = vor.u32 %v3216_v12, %v2175_v13 }
  0x2f   :  { %1352 = vmatpush.bf16.msra.mxu2 %v2402_v10  ;;  %1340 = vmatpush.bf16.msrb.mxu3 %v2258_v15  ;;  %v2846_v54 = vor.u32 %v3386_v45, %v2845_v44  ;;  %v2701_v56 = vld [vmem:[%s5185_s1 + $0x420] sm:$0xf]  ;;  %v3382_v61 = vld [vmem:[%s5185_s1 + $0x52c] sm:$0xf0]  ;;  %v2543_v15 = vld [vmem:[%s5185_s1 + $0x2f0] sm:$0xf0] }
  0x30   :  { %v2829_v59 = vld [vmem:[%s5185_s1 + $0x520] sm:$0xf]  ;;  %v2702_v2 = vor.u32 %v3350_v58, %v2701_v56  ;;  %v31_v5 = vld [vmem:[%s5186_s0 + $0x10] sm:$0xff]  ;;  %v3340_v16 = vld [vmem:[%s5185_s1 + $0x3e4] sm:$0xf] }
  0x31   :  { %1302 = vmatpush.bf16.msrb.mxu0 %v2750_v24  ;;  %1315 = vmatpush.bf16.msrb.mxu1 %v2878_v27  ;;  %v2685_v4 = vld [vmem:[%s5185_s1 + $0x400] sm:$0xf]  ;;  %v2830_v6 = vor.u32 %v3382_v61, %v2829_v59  ;;  %v3346_v8 = vld [vmem:[%s5185_s1 + $0x40c] sm:$0xf0]  ;;  %v2671_v17 = vld [vmem:[%s5185_s1 + $0x3f0] sm:$0xf0]  ;;  %v247_v18 = vunpack.c.l.b16 %v31_v5 }
  0x32   :  { %v2813_v10 = vld [vmem:[%s5185_s1 + $0x500] sm:$0xf]  ;;  %v3378_v11 = vld [vmem:[%s5185_s1 + $0x50c] sm:$0xf0]  ;;  %v2686_v20 = vor.u32 %v3346_v8, %v2685_v4  ;;  %v3372_v21 = vld [vmem:[%s5185_s1 + $0x4e4] sm:$0xf]  ;;  %v2674_v29 = vor.u32 %v3340_v16, %v2671_v17 }
  0x33   :  { %1353 = vmatpush.bf16.msra.mxu2 %v2386_v23  ;;  %1341 = vmatpush.bf16.msrb.mxu3 %v2242_v28  ;;  %v2799_v22 = vld [vmem:[%s5185_s1 + $0x4f0] sm:$0xf0]  ;;  %v248_v23 = vunpack.c.h.b16 %v31_v5  ;;  %v2814_v24 = vor.u32 %v3378_v11, %v2813_v10  ;;  %v3248_v26 = vld [vmem:[%s5185_s1 + $0x104] sm:$0xf]  ;;  %v2546_v28 = vor.u32 %v3308_v14, %v2543_v15  ;;  %v3966_v34 = vpack.c.b16 %v247_v18, %v247_v18 }
  0x34   :  { %v2303_v27 = vld [vmem:[%s5185_s1 + $0x110] sm:$0xf0]  ;;  %v3404_v30 = vld [vmem:[%s5185_s1 + $0x5e4] sm:$0xf]  ;;  %v2802_v33 = vor.u32 %v3372_v21, %v2799_v22 }
  0x35   :  { %1303 = vmatpush.bf16.msrb.mxu0 %v2734_v37  ;;  %1316 = vmatpush.bf16.msrb.mxu1 %v2862_v40  ;;  %v2927_v31 = vld [vmem:[%s5185_s1 + $0x5f0] sm:$0xf0]  ;;  %v3304_v32 = vld [vmem:[%s5185_s1 + $0x2c4] sm:$0xf]  ;;  %v2306_v38 = vor.u32 %v3248_v26, %v2303_v27  ;;  %v3977_v39 = vpack.c.b16 %v248_v23, %v248_v23 }
  0x36   :  { %2955 = vmatmul.msk.bf16.vlgmr.msrb.gmra.mxu2 %vm1243_vm0, %v3878_v48  ;;  %v2527_v35 = vld [vmem:[%s5185_s1 + $0x2d0] sm:$0xf0]  ;;  %v3368_v40 = vld [vmem:[%s5185_s1 + $0x4c4] sm:$0xf]  ;;  %v2930_v42 = vor.u32 %v3404_v30, %v2927_v31 }
  0x37   :  { %1354 = vmatpush.bf16.msra.mxu2 %v2370_v36  ;;  %1342 = vmatpush.bf16.msrb.mxu3 %v2226_v41  ;;  %v3336_v36 = vld [vmem:[%s5185_s1 + $0x3c4] sm:$0xf]  ;;  %v2655_v37 = vld [vmem:[%s5185_s1 + $0x3d0] sm:$0xf0]  ;;  %v2530_v43 = vor.u32 %v3304_v32, %v2527_v35 }
  0x38   :  { %v2783_v41 = vld [vmem:[%s5185_s1 + $0x4d0] sm:$0xf0]  ;;  %v2658_v44 = vor.u32 %v3336_v36, %v2655_v37  ;;  %v3400_v45 = vld [vmem:[%s5185_s1 + $0x5c4] sm:$0xf] }
  0x39   :  { %1304 = vmatpush.bf16.msrb.mxu0 %v2718_v50  ;;  %1317 = vmatpush.bf16.msrb.mxu1 %v2846_v54  ;;  %v2911_v46 = vld [vmem:[%s5185_s1 + $0x5d0] sm:$0xf0]  ;;  %v3300_v47 = vld [vmem:[%s5185_s1 + $0x2a4] sm:$0xf] }
  0x3a   :  { %v2511_v50 = vld [vmem:[%s5185_s1 + $0x2b0] sm:$0xf0]  ;;  %v3332_v51 = vld [vmem:[%s5185_s1 + $0x3a4] sm:$0xf]  ;;  %v2914_v56 = vor.u32 %v3400_v45, %v2911_v46 }
  0x3b   :  { %1355 = vmatpush.bf16.msra.mxu2 %v2354_v49  ;;  %1343 = vmatpush.bf16.msrb.mxu3 %v2210_v55  ;;  %v2786_v49 = vor.u32 %v3368_v40, %v2783_v41  ;;  %v2639_v52 = vld [vmem:[%s5185_s1 + $0x3b0] sm:$0xf0]  ;;  %v3364_v54 = vld [vmem:[%s5185_s1 + $0x4a4] sm:$0xf]  ;;  %v2514_v58 = vor.u32 %v3300_v47, %v2511_v50 }
  0x3c   :  { %v2767_v55 = vld [vmem:[%s5185_s1 + $0x4b0] sm:$0xf0]  ;;  %v2642_v59 = vor.u32 %v3332_v51, %v2639_v52  ;;  %v3396_v61 = vld [vmem:[%s5185_s1 + $0x5a4] sm:$0xf] }
  0x3d   :  { %1305 = vmatpush.bf16.msrb.mxu0 %v2702_v2  ;;  %1318 = vmatpush.bf16.msrb.mxu1 %v2830_v6  ;;  %v2895_v62 = vld [vmem:[%s5185_s1 + $0x5b0] sm:$0xf0]  ;;  %v3296_v63 = vld [vmem:[%s5185_s1 + $0x284] sm:$0xf]  ;;  %v2770_v0 = vor.u32 %v3364_v54, %v2767_v55 }
  0x3e   :  { %v3328_v2 = vld [vmem:[%s5185_s1 + $0x384] sm:$0xf]  ;;  %v2623_v3 = vld [vmem:[%s5185_s1 + $0x390] sm:$0xf0]  ;;  %v2898_v6 = vor.u32 %v3396_v61, %v2895_v62  ;;  %v2293_v61 = vld [vmem:[%s5185_s1 + $0xe8] sm:$0xf] }
  0x3f   :  { %1356 = vmatpush.bf16.msra.mxu2 %v2338_v1  ;;  %1344 = vmatpush.bf16.msrb.mxu3 %v2194_v7  ;;  %v2495_v1 = vld [vmem:[%s5185_s1 + $0x290] sm:$0xf0]  ;;  %v3360_v4 = vld [vmem:[%s5185_s1 + $0x484] sm:$0xf]  ;;  %v2626_v8 = vor.u32 %v3328_v2, %v2623_v3  ;;  %v3247_v62 = vld [vmem:[%s5185_s1 + $0xf4] sm:$0xf0] }
  0x40   :  { %v2751_v5 = vld [vmem:[%s5185_s1 + $0x490] sm:$0xf0]  ;;  %v2498_v7 = vor.u32 %v3296_v63, %v2495_v1  ;;  %v3392_v10 = vld [vmem:[%s5185_s1 + $0x584] sm:$0xf]  ;;  %v2549_v2 = vld [vmem:[%s5185_s1 + $0x2e8] sm:$0xf] }
  0x41   :  { %1306 = vmatpush.bf16.msrb.mxu0 %v2686_v20  ;;  %1319 = vmatpush.bf16.msrb.mxu1 %v2814_v24  ;;  %v2879_v11 = vld [vmem:[%s5185_s1 + $0x590] sm:$0xf0]  ;;  %v3292_v12 = vld [vmem:[%s5185_s1 + $0x264] sm:$0xf]  ;;  %v2754_v13 = vor.u32 %v3360_v4, %v2751_v5  ;;  %v3311_v3 = vld [vmem:[%s5185_s1 + $0x2f4] sm:$0xf0] }
  0x42   :  { %v2479_v14 = vld [vmem:[%s5185_s1 + $0x270] sm:$0xf0]  ;;  %v3324_v15 = vld [vmem:[%s5185_s1 + $0x364] sm:$0xf] }
  0x43   :  { %1357 = vmatpush.bf16.msra.mxu2 %v2322_v19  ;;  %1345 = vmatpush.bf16.msrb.mxu3 %v2178_v25  ;;  %v2607_v16 = vld [vmem:[%s5185_s1 + $0x370] sm:$0xf0]  ;;  %v3356_v17 = vld [vmem:[%s5185_s1 + $0x464] sm:$0xf]  ;;  %v2882_v19 = vor.u32 %v3392_v10, %v2879_v11  ;;  %v2482_v20 = vor.u32 %v3292_v12, %v2479_v14  ;;  %v2294_v10 = vor.u32 %v3247_v62, %v2293_v61  ;;  %v2677_v11 = vld [vmem:[%s5185_s1 + $0x3e8] sm:$0xf] }
  0x44   :  { %1307 = vmatmul.bf16.vlgmr.msrb.gmra.mxu0 %v3966_v34  ;;  %1320 = vmatmul.bf16.vlgmr.msrb.gmra.mxu1 %v3977_v39  ;;  %v2735_v18 = vld [vmem:[%s5185_s1 + $0x470] sm:$0xf0]  ;;  %v2610_v21 = vor.u32 %v3324_v15, %v2607_v16  ;;  %v3388_v22 = vld [vmem:[%s5185_s1 + $0x564] sm:$0xf]  ;;  %v3343_v12 = vld [vmem:[%s5185_s1 + $0x3f4] sm:$0xf0]  ;;  %v2550_v16 = vor.u32 %v3311_v3, %v2549_v2 }
  0x45   :  { %1364 = vmatpush.bf16.msra.mxu0 %v2546_v28  ;;  %1377 = vmatpush.bf16.msra.mxu1 %v2674_v29  ;;  %v2863_v23 = vld [vmem:[%s5185_s1 + $0x570] sm:$0xf0]  ;;  %v3288_v24 = vld [vmem:[%s5185_s1 + $0x244] sm:$0xf]  ;;  %v2738_v25 = vor.u32 %v3356_v17, %v2735_v18  ;;  %v2421_v14 = vld [vmem:[%s5185_s1 + $0x1e8] sm:$0xf] }
  0x46   :  { %1346 = vmatmul.bf16.vlgmr.msrb.gmra.mxu3 %v3769_v57  ;;  %v2463_v26 = vld [vmem:[%s5185_s1 + $0x250] sm:$0xf0]  ;;  %v3320_v27 = vld [vmem:[%s5185_s1 + $0x344] sm:$0xf]  ;;  %v2866_v31 = vor.u32 %v3388_v22, %v2863_v23  ;;  %v3279_v15 = vld [vmem:[%s5185_s1 + $0x1f4] sm:$0xf0] }
  0x47   :  { %1390 = vmatpush.bf16.msra.mxu3 %v2802_v33  ;;  %1358 = vmatpush.bf16.msra.mxu2 %v2306_v38  ;;  %v2591_v28 = vld [vmem:[%s5185_s1 + $0x350] sm:$0xf0]  ;;  %v3352_v29 = vld [vmem:[%s5185_s1 + $0x444] sm:$0xf]  ;;  %v2466_v32 = vor.u32 %v3288_v24, %v2463_v26  ;;  %v2277_v18 = vld [vmem:[%s5185_s1 + $0xc8] sm:$0xf]  ;;  %v2422_v23 = vor.u32 %v3279_v15, %v2421_v14 }
  0x48   :  { %v2719_v30 = vld [vmem:[%s5185_s1 + $0x450] sm:$0xf0]  ;;  %v2594_v33 = vor.u32 %v3320_v27, %v2591_v28  ;;  %v3384_v35 = vld [vmem:[%s5185_s1 + $0x544] sm:$0xf]  ;;  %v3307_v22 = vld [vmem:[%s5185_s1 + $0x2d4] sm:$0xf0] }
  0x49   :  { %1365 = vmatpush.bf16.msra.mxu0 %v2530_v43  ;;  %1378 = vmatpush.bf16.msra.mxu1 %v2658_v44  ;;  %v2847_v36 = vld [vmem:[%s5185_s1 + $0x550] sm:$0xf0]  ;;  %v3284_v37 = vld [vmem:[%s5185_s1 + $0x224] sm:$0xf]  ;;  %v2722_v38 = vor.u32 %v3352_v29, %v2719_v30  ;;  %v2661_v24 = vld [vmem:[%s5185_s1 + $0x3c8] sm:$0xf] }
  0x4a   :  { %1359 = vmatmul.bf16.vlgmr.msra.gmra.mxu2 %v3799_v9  ;;  %v2447_v40 = vld [vmem:[%s5185_s1 + $0x230] sm:$0xf0]  ;;  %v3316_v41 = vld [vmem:[%s5185_s1 + $0x324] sm:$0xf]  ;;  %v2850_v45 = vor.u32 %v3384_v35, %v2847_v36  ;;  %v2405_v27 = vld [vmem:[%s5185_s1 + $0x1c8] sm:$0xf] }
  0x4b   :  { %1403 = vmatpush.bf16.msrb.mxu2 %v2930_v42  ;;  %1391 = vmatpush.bf16.msra.mxu3 %v2786_v49  ;;  %v2575_v42 = vld [vmem:[%s5185_s1 + $0x330] sm:$0xf0]  ;;  %v3348_v43 = vld [vmem:[%s5185_s1 + $0x424] sm:$0xf]  ;;  %v2450_v49 = vor.u32 %v3284_v37, %v2447_v40  ;;  %v3275_v28 = vld [vmem:[%s5185_s1 + $0x1d4] sm:$0xf0] }
  0x4c   :  { %v2703_v44 = vld [vmem:[%s5185_s1 + $0x430] sm:$0xf0]  ;;  %v3380_v46 = vld [vmem:[%s5185_s1 + $0x524] sm:$0xf]  ;;  %v2578_v50 = vor.u32 %v3316_v41, %v2575_v42  ;;  %v2261_v30 = vld [vmem:[%s5185_s1 + $0xa8] sm:$0xf]  ;;  %v2406_v36 = vor.u32 %v3275_v28, %v2405_v27 }
  0x4d   :  { %1366 = vmatpush.bf16.msra.mxu0 %v2514_v58  ;;  %1379 = vmatpush.bf16.msra.mxu1 %v2642_v59  ;;  %v2831_v47 = vld [vmem:[%s5185_s1 + $0x530] sm:$0xf0]  ;;  %v3280_v51 = vld [vmem:[%s5185_s1 + $0x204] sm:$0xf]  ;;  %v2706_v55 = vor.u32 %v3348_v43, %v2703_v44  ;;  %v3303_v35 = vld [vmem:[%s5185_s1 + $0x2b4] sm:$0xf0] }
  0x4e   :  { %v2431_v52 = vld [vmem:[%s5185_s1 + $0x210] sm:$0xf0]  ;;  %v3312_v54 = vld [vmem:[%s5185_s1 + $0x304] sm:$0xf]  ;;  %v2645_v37 = vld [vmem:[%s5185_s1 + $0x3a8] sm:$0xf] }
  0x4f   :  { %1404 = vmatpush.bf16.msrb.mxu2 %v2914_v56  ;;  %1392 = vmatpush.bf16.msra.mxu3 %v2770_v0  ;;  %v2559_v56 = vld [vmem:[%s5185_s1 + $0x310] sm:$0xf0]  ;;  %v3344_v58 = vld [vmem:[%s5185_s1 + $0x404] sm:$0xf]  ;;  %v2834_v0 = vor.u32 %v3380_v46, %v2831_v47  ;;  %v2434_v4 = vor.u32 %v3280_v51, %v2431_v52  ;;  %v2389_v41 = vld [vmem:[%s5185_s1 + $0x1a8] sm:$0xf] }
  0x50   :  { %v2687_v59 = vld [vmem:[%s5185_s1 + $0x410] sm:$0xf0]  ;;  %v3408_v63 = vld [vmem:[%s5185_s1 + $0x604] sm:$0xf]  ;;  %v2562_v5 = vor.u32 %v3312_v54, %v2559_v56  ;;  %v3271_v42 = vld [vmem:[%s5185_s1 + $0x1b4] sm:$0xf0] }
  0x51   :  { %1367 = vmatpush.bf16.msra.mxu0 %v2498_v7  ;;  %1380 = vmatpush.bf16.msra.mxu1 %v2626_v8  ;;  %v2943_v1 = vld [vmem:[%s5185_s1 + $0x610] sm:$0xf0]  ;;  %v2690_v8 = vor.u32 %v3344_v58, %v2687_v59  ;;  %v2245_v44 = vld [vmem:[%s5185_s1 + $0x88] sm:$0xf]  ;;  %v3331_v52 = vld [vmem:[%s5185_s1 + $0x394] sm:$0xf0] }
  0x52   :  { %v2815_v7 = vld [vmem:[%s5185_s1 + $0x510] sm:$0xf0]  ;;  %v2501_v47 = vld [vmem:[%s5185_s1 + $0x288] sm:$0xf]  ;;  %v3267_v56 = vld [vmem:[%s5185_s1 + $0x194] sm:$0xf0] }
  0x53   :  { %1405 = vmatpush.bf16.msrb.mxu2 %v2898_v6  ;;  %1393 = vmatpush.bf16.msra.mxu3 %v2754_v13  ;;  %v3376_v6 = vld [vmem:[%s5185_s1 + $0x504] sm:$0xf]  ;;  %v2946_v13 = vor.u32 %v3408_v63, %v2943_v1  ;;  %v2629_v51 = vld [vmem:[%s5185_s1 + $0x388] sm:$0xf]  ;;  %v3231_v61 = vld [vmem:[%s5185_s1 + $0x74] sm:$0xf0] }
  0x54   :  { %v2818_v17 = vor.u32 %v3376_v6, %v2815_v7  ;;  %v2229_v59 = vld [vmem:[%s5185_s1 + $0x68] sm:$0xf]  ;;  %v2630_v62 = vor.u32 %v3331_v52, %v2629_v51  ;;  %v3327_v3 = vld [vmem:[%s5185_s1 + $0x374] sm:$0xf0]  ;;  %v3245_v51 = vld [vmem:[%s5185_s1 + $0xec] sm:$0xf] }
  0x55   :  { %1368 = vmatpush.bf16.msra.mxu0 %v2482_v20  ;;  %1381 = vmatpush.bf16.msra.mxu1 %v2610_v21  ;;  %v2678_v20 = vor.u32 %v3343_v12, %v2677_v11  ;;  %v2533_v21 = vld [vmem:[%s5185_s1 + $0x2c8] sm:$0xf]  ;;  %v3263_v6 = vld [vmem:[%s5185_s1 + $0x174] sm:$0xf0]  ;;  %v2295_v52 = vld [vmem:[%s5185_s1 + $0xf8] sm:$0xf0] }
  0x56   :  { %v2534_v29 = vor.u32 %v3307_v22, %v2533_v21  ;;  %v2485_v63 = vld [vmem:[%s5185_s1 + $0x268] sm:$0xf]  ;;  %v3223_v22 = vld [vmem:[%s5185_s1 + $0x34] sm:$0xf0] }
  0x57   :  { %1406 = vmatpush.bf16.msrb.mxu2 %v2882_v19  ;;  %1394 = vmatpush.bf16.msra.mxu3 %v2738_v25  ;;  %v3243_v19 = vld [vmem:[%s5185_s1 + $0xd4] sm:$0xf0]  ;;  %v2613_v2 = vld [vmem:[%s5185_s1 + $0x368] sm:$0xf] }
  0x58   :  { %v3339_v25 = vld [vmem:[%s5185_s1 + $0x3d4] sm:$0xf0]  ;;  %v2278_v26 = vor.u32 %v3243_v19, %v2277_v18  ;;  %v2614_v11 = vor.u32 %v3327_v3, %v2613_v2  ;;  %v2469_v12 = vld [vmem:[%s5185_s1 + $0x248] sm:$0xf]  ;;  %v2298_v3 = vor.u32 %v3245_v51, %v2295_v52 }
  0x59   :  { %1369 = vmatpush.bf16.msra.mxu0 %v2466_v32  ;;  %1382 = vmatpush.bf16.msra.mxu1 %v2594_v33  ;;  %v2662_v32 = vor.u32 %v3339_v25, %v2661_v24  ;;  %v2517_v33 = vld [vmem:[%s5185_s1 + $0x2a8] sm:$0xf]  ;;  %v3259_v19 = vld [vmem:[%s5185_s1 + $0x154] sm:$0xf0] }
  0x5a   :  { %v2518_v43 = vor.u32 %v3303_v35, %v2517_v33  ;;  %v2597_v15 = vld [vmem:[%s5185_s1 + $0x348] sm:$0xf]  ;;  %v3287_v25 = vld [vmem:[%s5185_s1 + $0x234] sm:$0xf0] }
  0x5b   :  { %1407 = vmatpush.bf16.msrb.mxu2 %v2866_v31  ;;  %1395 = vmatpush.bf16.msra.mxu3 %v2722_v38  ;;  %v3239_v31 = vld [vmem:[%s5185_s1 + $0xb4] sm:$0xf0]  ;;  %v2341_v18 = vld [vmem:[%s5185_s1 + $0x148] sm:$0xf] }
  0x5c   :  { %v3335_v38 = vld [vmem:[%s5185_s1 + $0x3b4] sm:$0xf0]  ;;  %v2262_v40 = vor.u32 %v3239_v31, %v2261_v30  ;;  %v2197_v21 = vld [vmem:[%s5185_s1 + $0x28] sm:$0xf] }
  0x5d   :  { %1370 = vmatpush.bf16.msra.mxu0 %v2450_v49  ;;  %1383 = vmatpush.bf16.msra.mxu1 %v2578_v50  ;;  %v2646_v46 = vor.u32 %v3335_v38, %v2645_v37  ;;  %v3299_v49 = vld [vmem:[%s5185_s1 + $0x294] sm:$0xf0]  ;;  %v2390_v50 = vor.u32 %v3271_v42, %v2389_v41  ;;  %v2453_v24 = vld [vmem:[%s5185_s1 + $0x228] sm:$0xf] }
  0x5e   :  { %v2502_v58 = vor.u32 %v3299_v49, %v2501_v47  ;;  %v2581_v27 = vld [vmem:[%s5185_s1 + $0x328] sm:$0xf]  ;;  %v3319_v28 = vld [vmem:[%s5185_s1 + $0x334] sm:$0xf0]  ;;  %v2454_v33 = vor.u32 %v3287_v25, %v2453_v24 }
  0x5f   :  { %1408 = vmatpush.bf16.msrb.mxu2 %v2850_v45  ;;  %1396 = vmatpush.bf16.msra.mxu3 %v2706_v55  ;;  %v3235_v45 = vld [vmem:[%s5185_s1 + $0x94] sm:$0xf0]  ;;  %v2373_v55 = vld [vmem:[%s5185_s1 + $0x188] sm:$0xf]  ;;  %v2582_v38 = vor.u32 %v3319_v28, %v2581_v27  ;;  %v2391_v27 = vld [vmem:[%s5185_s1 + $0x1b8] sm:$0xf0] }
  0x60   :  { %v2246_v54 = vor.u32 %v3235_v45, %v2245_v44  ;;  %v2374_v1 = vor.u32 %v3267_v56, %v2373_v55  ;;  %v2325_v30 = vld [vmem:[%s5185_s1 + $0x128] sm:$0xf]  ;;  %v3255_v31 = vld [vmem:[%s5185_s1 + $0x134] sm:$0xf0] }
  0x61   :  { %1371 = vmatpush.bf16.msra.mxu0 %v2434_v4  ;;  %1384 = vmatpush.bf16.msra.mxu1 %v2562_v5  ;;  %v2230_v4 = vor.u32 %v3231_v61, %v2229_v59  ;;  %v2357_v5 = vld [vmem:[%s5185_s1 + $0x168] sm:$0xf]  ;;  %v3219_v35 = vld [vmem:[%s5185_s1 + $0x14] sm:$0xf0]  ;;  %v2326_v44 = vor.u32 %v3255_v31, %v2325_v30  ;;  %v3233_v30 = vld [vmem:[%s5185_s1 + $0x8c] sm:$0xf] }
  0x62   :  { %v2358_v14 = vor.u32 %v3263_v6, %v2357_v5  ;;  %v3375_v37 = vld [vmem:[%s5185_s1 + $0x4f4] sm:$0xf0]  ;;  %v2437_v41 = vld [vmem:[%s5185_s1 + $0x208] sm:$0xf]  ;;  %v3241_v5 = vld [vmem:[%s5185_s1 + $0xcc] sm:$0xf] }
  0x63   :  { %1409 = vmatpush.bf16.msrb.mxu2 %v2834_v0  ;;  %1397 = vmatpush.bf16.msra.mxu3 %v2690_v8  ;;  %v3295_v0 = vld [vmem:[%s5185_s1 + $0x274] sm:$0xf0]  ;;  %v2213_v8 = vld [vmem:[%s5185_s1 + $0x48] sm:$0xf]  ;;  %v2279_v6 = vld [vmem:[%s5185_s1 + $0xd8] sm:$0xf0] }
  0x64   :  { %1372 = vmatmul.bf16.vlgmr.msra.gmra.mxu0 %v3758_v53  ;;  %1385 = vmatmul.bf16.vlgmr.msra.gmra.mxu1 %v3771_v60  ;;  %v2486_v7 = vor.u32 %v3295_v0, %v2485_v63  ;;  %v3283_v42 = vld [vmem:[%s5185_s1 + $0x214] sm:$0xf0]  ;;  %v2933_v56 = vld [vmem:[%s5185_s1 + $0x5e8] sm:$0xf]  ;;  %v3277_v0 = vld [vmem:[%s5185_s1 + $0x1ec] sm:$0xf] }
  0x65   :  { %1429 = vmatpush.bf16.msrb.mxu1 %v2294_v10  ;;  %1455 = vmatpush.bf16.msrb.mxu0 %v2550_v16  ;;  %v3227_v10 = vld [vmem:[%s5185_s1 + $0x54] sm:$0xf0]  ;;  %v2438_v55 = vor.u32 %v3283_v42, %v2437_v41  ;;  %v2789_v59 = vld [vmem:[%s5185_s1 + $0x4c8] sm:$0xf]  ;;  %v2247_v31 = vld [vmem:[%s5185_s1 + $0x98] sm:$0xf0] }
  0x66   :  { %1398 = vmatmul.bf16.vlgmr.msra.gmra.mxu3 %v3966_v34  ;;  %v3323_v16 = vld [vmem:[%s5185_s1 + $0x354] sm:$0xf0]  ;;  %v2757_v24 = vld [vmem:[%s5185_s1 + $0x488] sm:$0xf]  ;;  %v2375_v41 = vld [vmem:[%s5185_s1 + $0x198] sm:$0xf0]  ;;  %v2250_v42 = vor.u32 %v3233_v30, %v2247_v31 }
  0x67   :  { %1423 = vmatpush.bf16.msrb.mxu3 %v2946_v13  ;;  %1410 = vmatpush.bf16.msrb.mxu2 %v2818_v17  ;;  %v3291_v13 = vld [vmem:[%s5185_s1 + $0x254] sm:$0xf0]  ;;  %v2214_v17 = vor.u32 %v3227_v10, %v2213_v8  ;;  %v2917_v10 = vld [vmem:[%s5185_s1 + $0x5c8] sm:$0xf]  ;;  %v2679_v30 = vld [vmem:[%s5185_s1 + $0x3f8] sm:$0xf0] }
  0x68   :  { %v3315_v45 = vld [vmem:[%s5185_s1 + $0x314] sm:$0xf0]  ;;  %v2725_v51 = vld [vmem:[%s5185_s1 + $0x448] sm:$0xf] }
  0x69   :  { %1430 = vmatpush.bf16.msrb.mxu1 %v2278_v26  ;;  %1456 = vmatpush.bf16.msrb.mxu0 %v2534_v29  ;;  %v2342_v26 = vor.u32 %v3259_v19, %v2341_v18  ;;  %v2198_v29 = vor.u32 %v3223_v22, %v2197_v21  ;;  %v3411_v47 = vld [vmem:[%s5185_s1 + $0x614] sm:$0xf0]  ;;  %v3237_v18 = vld [vmem:[%s5185_s1 + $0xac] sm:$0xf]  ;;  %v2263_v19 = vld [vmem:[%s5185_s1 + $0xb8] sm:$0xf0] }
  0x6a   :  { %1411 = vmatmul.bf16.vlgmr.msrb.gmra.mxu2 %v3977_v39  ;;  %v2901_v22 = vld [vmem:[%s5185_s1 + $0x5a8] sm:$0xf]  ;;  %v3363_v25 = vld [vmem:[%s5185_s1 + $0x494] sm:$0xf0]  ;;  %v2266_v28 = vor.u32 %v3237_v18, %v2263_v19  ;;  %v2327_v18 = vld [vmem:[%s5185_s1 + $0x138] sm:$0xf0] }
  0x6b   :  { %1468 = vmatpush.bf16.msra.mxu2 %v2678_v20  ;;  %1442 = vmatpush.bf16.msra.mxu3 %v2422_v23  ;;  %v2470_v20 = vor.u32 %v3291_v13, %v2469_v12  ;;  %v2598_v23 = vor.u32 %v3323_v16, %v2597_v15  ;;  %v2773_v12 = vld [vmem:[%s5185_s1 + $0x4a8] sm:$0xf]  ;;  %v3367_v13 = vld [vmem:[%s5185_s1 + $0x4b4] sm:$0xf0]  ;;  %v2407_v15 = vld [vmem:[%s5185_s1 + $0x1d8] sm:$0xf0]  ;;  %v2282_v16 = vor.u32 %v3241_v5, %v2279_v6 }
  0x6c   :  { %v3355_v52 = vld [vmem:[%s5185_s1 + $0x454] sm:$0xf0]  ;;  %v2343_v5 = vld [vmem:[%s5185_s1 + $0x158] sm:$0xf0] }
  0x6d   :  { %1431 = vmatpush.bf16.msrb.mxu1 %v2262_v40  ;;  %1457 = vmatpush.bf16.msrb.mxu0 %v2518_v43  ;;  %v2309_v40 = vld [vmem:[%s5185_s1 + $0x108] sm:$0xf] }
  0x6e   :  { %v2565_v43 = vld [vmem:[%s5185_s1 + $0x308] sm:$0xf] }
  0x6f   :  { %1469 = vmatpush.bf16.msra.mxu2 %v2662_v32  ;;  %1443 = vmatpush.bf16.msra.mxu3 %v2406_v36  ;;  %v2181_v32 = vld [vmem:[%s5185_s1 + $0x8] sm:$0xf]  ;;  %v2566_v61 = vor.u32 %v3315_v45, %v2565_v43  ;;  %v2231_v45 = vld [vmem:[%s5185_s1 + $0x78] sm:$0xf0] }
  0x70   :  { %v2805_v36 = vld [vmem:[%s5185_s1 + $0x4e8] sm:$0xf]  ;;  %v2182_v49 = vor.u32 %v3219_v35, %v2181_v32  ;;  %v2758_v32 = vor.u32 %v3363_v25, %v2757_v24  ;;  %v3217_v24 = vld [vmem:[%s5185_s1 + $0xc] sm:$0xf]  ;;  %v2183_v25 = vld [vmem:[%s5185_s1 + $0x18] sm:$0xf0] }
  0x71   :  { %1432 = vmatpush.bf16.msrb.mxu1 %v2246_v54  ;;  %1458 = vmatpush.bf16.msrb.mxu0 %v2502_v58  ;;  %v2806_v54 = vor.u32 %v3375_v37, %v2805_v36  ;;  %v3407_v58 = vld [vmem:[%s5185_s1 + $0x5f4] sm:$0xf0]  ;;  %v2885_v35 = vld [vmem:[%s5185_s1 + $0x588] sm:$0xf] }
  0x72   :  { %v3395_v36 = vld [vmem:[%s5185_s1 + $0x594] sm:$0xf0]  ;;  %v2741_v37 = vld [vmem:[%s5185_s1 + $0x468] sm:$0xf] }
  0x73   :  { %1470 = vmatpush.bf16.msra.mxu2 %v2646_v46  ;;  %1444 = vmatpush.bf16.msra.mxu3 %v2390_v50  ;;  %v2949_v46 = vld [vmem:[%s5185_s1 + $0x608] sm:$0xf]  ;;  %v3251_v50 = vld [vmem:[%s5185_s1 + $0x114] sm:$0xf0]  ;;  %v2886_v43 = vor.u32 %v3395_v36, %v2885_v35  ;;  %v3305_v35 = vld [vmem:[%s5185_s1 + $0x2cc] sm:$0xf]  ;;  %v2186_v36 = vor.u32 %v3217_v24, %v2183_v25 }
  0x74   :  { %v2950_v63 = vor.u32 %v3411_v47, %v2949_v46  ;;  %v2310_v2 = vor.u32 %v3251_v50, %v2309_v40  ;;  %v3265_v40 = vld [vmem:[%s5185_s1 + $0x18c] sm:$0xf]  ;;  %v3391_v50 = vld [vmem:[%s5185_s1 + $0x574] sm:$0xf0]  ;;  %v2615_v25 = vld [vmem:[%s5185_s1 + $0x378] sm:$0xf0] }
  0x75   :  { %1433 = vmatpush.bf16.msrb.mxu1 %v2230_v4  ;;  %1459 = vmatpush.bf16.msrb.mxu0 %v2486_v7  ;;  %v2934_v4 = vor.u32 %v3407_v58, %v2933_v56  ;;  %v2378_v47 = vor.u32 %v3265_v40, %v2375_v41  ;;  %v2311_v40 = vld [vmem:[%s5185_s1 + $0x118] sm:$0xf0] }
  0x76   :  { %2956 = vmatmul.msk.bf16.vlgmr.msrb.gmra.mxu3 %vm1243_vm0, %v3878_v48 }
  0x77   :  { %1471 = vmatpush.bf16.msra.mxu2 %v2630_v62  ;;  %1445 = vmatpush.bf16.msra.mxu3 %v2374_v1  ;;  %v3371_v62 = vld [vmem:[%s5185_s1 + $0x4d4] sm:$0xf0]  ;;  %v2423_v1 = vld [vmem:[%s5185_s1 + $0x1f8] sm:$0xf0] }
  0x78   :  { %v2790_v7 = vor.u32 %v3371_v62, %v2789_v59  ;;  %v2426_v8 = vor.u32 %v3277_v0, %v2423_v1  ;;  %v3225_v59 = vld [vmem:[%s5185_s1 + $0x4c] sm:$0xf]  ;;  %v2726_v62 = vor.u32 %v3355_v52, %v2725_v51  ;;  %v2853_v0 = vld [vmem:[%s5185_s1 + $0x548] sm:$0xf]  ;;  %v3387_v1 = vld [vmem:[%s5185_s1 + $0x554] sm:$0xf0] }
  0x79   :  { %1434 = vmatpush.bf16.msrb.mxu1 %v2214_v17  ;;  %1460 = vmatpush.bf16.msrb.mxu0 %v2470_v20  ;;  %v2774_v20 = vor.u32 %v3367_v13, %v2773_v12  ;;  %v2837_v13 = vld [vmem:[%s5185_s1 + $0x528] sm:$0xf]  ;;  %v3369_v51 = vld [vmem:[%s5185_s1 + $0x4cc] sm:$0xf]  ;;  %v2791_v52 = vld [vmem:[%s5185_s1 + $0x4d8] sm:$0xf0] }
  0x7b   :  { %1472 = vmatpush.bf16.msra.mxu2 %v2614_v11  ;;  %1446 = vmatpush.bf16.msra.mxu3 %v2358_v14  ;;  %v3403_v11 = vld [vmem:[%s5185_s1 + $0x5d4] sm:$0xf0]  ;;  %v3273_v14 = vld [vmem:[%s5185_s1 + $0x1cc] sm:$0xf] }
  0x7c   :  { %v2918_v17 = vor.u32 %v3403_v11, %v2917_v10  ;;  %v2410_v21 = vor.u32 %v3273_v14, %v2407_v15  ;;  %v2199_v10 = vld [vmem:[%s5185_s1 + $0x38] sm:$0xf0]  ;;  %v3383_v14 = vld [vmem:[%s5185_s1 + $0x534] sm:$0xf0]  ;;  %v2693_v15 = vld [vmem:[%s5185_s1 + $0x408] sm:$0xf] }
  0x7d   :  { %1435 = vmatpush.bf16.msrb.mxu1 %v2198_v29  ;;  %1461 = vmatpush.bf16.msrb.mxu0 %v2454_v33 }
  0x7f   :  { %1473 = vmatpush.bf16.msra.mxu2 %v2598_v23  ;;  %1447 = vmatpush.bf16.msra.mxu3 %v2342_v26  ;;  %v3399_v23 = vld [vmem:[%s5185_s1 + $0x5b4] sm:$0xf0]  ;;  %v3269_v26 = vld [vmem:[%s5185_s1 + $0x1ac] sm:$0xf] }
  0x80   :  { %v2902_v29 = vor.u32 %v3399_v23, %v2901_v22  ;;  %v2394_v33 = vor.u32 %v3269_v26, %v2391_v27  ;;  %v2838_v22 = vor.u32 %v3383_v14, %v2837_v13  ;;  %v2821_v23 = vld [vmem:[%s5185_s1 + $0x508] sm:$0xf]  ;;  %v3361_v14 = vld [vmem:[%s5185_s1 + $0x48c] sm:$0xf] }
  0x81   :  { %1436 = vmatpush.bf16.msrb.mxu1 %v2182_v49  ;;  %1462 = vmatpush.bf16.msrb.mxu0 %v2438_v55  ;;  %v2869_v49 = vld [vmem:[%s5185_s1 + $0x568] sm:$0xf]  ;;  %v2359_v55 = vld [vmem:[%s5185_s1 + $0x178] sm:$0xf0] }
  0x82   :  { %v2870_v58 = vor.u32 %v3391_v50, %v2869_v49  ;;  %v2663_v50 = vld [vmem:[%s5185_s1 + $0x3d8] sm:$0xf0] }
  0x83   :  { %1474 = vmatpush.bf16.msra.mxu2 %v2582_v38  ;;  %1448 = vmatpush.bf16.msra.mxu3 %v2326_v44  ;;  %v3359_v38 = vld [vmem:[%s5185_s1 + $0x474] sm:$0xf0]  ;;  %v3229_v44 = vld [vmem:[%s5185_s1 + $0x6c] sm:$0xf] }
  0x84   :  { %1463 = vmatmul.bf16.vlgmr.msrb.gmra.mxu0 %v3758_v53  ;;  %1437 = vmatmul.bf16.vlgmr.msrb.gmra.mxu1 %v3769_v57  ;;  %v2742_v46 = vor.u32 %v3359_v38, %v2741_v37  ;;  %v2234_v56 = vor.u32 %v3229_v44, %v2231_v45  ;;  %v2535_v37 = vld [vmem:[%s5185_s1 + $0x2d8] sm:$0xf0]  ;;  %v3249_v38 = vld [vmem:[%s5185_s1 + $0x10c] sm:$0xf] }
  0x85   :  { %1481 = vmatpush.bf16.msra.mxu1 %v2806_v54  ;;  %1514 = vmatpush.bf16.msra.mxu0 %v2950_v63  ;;  %v3261_v54 = vld [vmem:[%s5185_s1 + $0x16c] sm:$0xf]  ;;  %v2314_v49 = vor.u32 %v3249_v38, %v2311_v40 }
  0x86   :  { %v2362_v63 = vor.u32 %v3261_v54, %v2359_v55  ;;  %v3301_v55 = vld [vmem:[%s5185_s1 + $0x2ac] sm:$0xf] }
  0x87   :  { %1475 = vmatpush.bf16.msra.mxu2 %v2566_v61  ;;  %1449 = vmatpush.bf16.msra.mxu3 %v2310_v2  ;;  %v2215_v61 = vld [vmem:[%s5185_s1 + $0x58] sm:$0xf0]  ;;  %v2709_v2 = vld [vmem:[%s5185_s1 + $0x428] sm:$0xf]  ;;  %v3321_v38 = vld [vmem:[%s5185_s1 + $0x34c] sm:$0xf] }
  0x88   :  { %v2218_v6 = vor.u32 %v3225_v59, %v2215_v61  ;;  %v2919_v59 = vld [vmem:[%s5185_s1 + $0x5d8] sm:$0xf0] }
  0x89   :  { %1482 = vmatpush.bf16.msra.mxu1 %v2790_v7  ;;  %1533 = vmatpush.bf16.msrb.mxu0 %v2426_v8  ;;  %v2854_v7 = vor.u32 %v3387_v1, %v2853_v0  ;;  %v3221_v8 = vld [vmem:[%s5185_s1 + $0x2c] sm:$0xf]  ;;  %v2647_v1 = vld [vmem:[%s5185_s1 + $0x3b8] sm:$0xf0] }
  0x8a   :  { %1450 = vmatmul.bf16.vlgmr.msra.gmra.mxu3 %v3799_v9  ;;  %1476 = vmatmul.bf16.vlgmr.msra.gmra.mxu2 %v3771_v60  ;;  %v2202_v19 = vor.u32 %v3221_v8, %v2199_v10  ;;  %v2903_v8 = vld [vmem:[%s5185_s1 + $0x5b8] sm:$0xf0] }
  0x8b   :  { %1520 = vmatpush.bf16.msrb.mxu2 %v2298_v3  ;;  %1494 = vmatpush.bf16.msrb.mxu3 %v2934_v4  ;;  %v3351_v3 = vld [vmem:[%s5185_s1 + $0x434] sm:$0xf0]  ;;  %v3257_v4 = vld [vmem:[%s5185_s1 + $0x14c] sm:$0xf] }
  0x8c   :  { %v2710_v11 = vor.u32 %v3351_v3, %v2709_v2  ;;  %v2346_v12 = vor.u32 %v3257_v4, %v2343_v5  ;;  %v3365_v2 = vld [vmem:[%s5185_s1 + $0x4ac] sm:$0xf]  ;;  %v2775_v3 = vld [vmem:[%s5185_s1 + $0x4b8] sm:$0xf0] }
  0x8d   :  { %1483 = vmatpush.bf16.msra.mxu1 %v2774_v20  ;;  %1534 = vmatpush.bf16.msrb.mxu0 %v2410_v21  ;;  %v3309_v20 = vld [vmem:[%s5185_s1 + $0x2ec] sm:$0xf]  ;;  %v2551_v21 = vld [vmem:[%s5185_s1 + $0x2f8] sm:$0xf0] }
  0x8e   :  { %v2554_v31 = vor.u32 %v3309_v20, %v2551_v21  ;;  %v3297_v5 = vld [vmem:[%s5185_s1 + $0x28c] sm:$0xf] }
  0x8f   :  { %1521 = vmatpush.bf16.msrb.mxu2 %v2282_v16  ;;  %1495 = vmatpush.bf16.msrb.mxu3 %v2918_v17  ;;  %v3347_v16 = vld [vmem:[%s5185_s1 + $0x414] sm:$0xf0]  ;;  %v3253_v17 = vld [vmem:[%s5185_s1 + $0x12c] sm:$0xf] }
  0x90   :  { %v2694_v26 = vor.u32 %v3347_v16, %v2693_v15  ;;  %v2330_v27 = vor.u32 %v3253_v17, %v2327_v18  ;;  %v2759_v15 = vld [vmem:[%s5185_s1 + $0x498] sm:$0xf0]  ;;  %v3293_v17 = vld [vmem:[%s5185_s1 + $0x26c] sm:$0xf] }
  0x91   :  { %1484 = vmatpush.bf16.msra.mxu1 %v2758_v32  ;;  %1535 = vmatpush.bf16.msrb.mxu0 %v2394_v33  ;;  %v3373_v32 = vld [vmem:[%s5185_s1 + $0x4ec] sm:$0xf]  ;;  %v2807_v33 = vld [vmem:[%s5185_s1 + $0x4f8] sm:$0xf0] }
  0x92   :  { %v2810_v45 = vor.u32 %v3373_v32, %v2807_v33  ;;  %v2487_v18 = vld [vmem:[%s5185_s1 + $0x278] sm:$0xf0]  ;;  %v3393_v20 = vld [vmem:[%s5185_s1 + $0x58c] sm:$0xf] }
  0x93   :  { %1522 = vmatpush.bf16.msrb.mxu2 %v2266_v28  ;;  %1496 = vmatpush.bf16.msrb.mxu3 %v2902_v29  ;;  %v3379_v28 = vld [vmem:[%s5185_s1 + $0x514] sm:$0xf0]  ;;  %v3341_v29 = vld [vmem:[%s5185_s1 + $0x3ec] sm:$0xf]  ;;  %v2490_v24 = vor.u32 %v3293_v17, %v2487_v18  ;;  %v2871_v33 = vld [vmem:[%s5185_s1 + $0x578] sm:$0xf0] }
  0x94   :  { %2957 = vmatmul.msk.bf16.vlgmr.msra.gmra.mxu0 %vm1243_vm0, %v3878_v48  ;;  %v2822_v41 = vor.u32 %v3379_v28, %v2821_v23  ;;  %v2682_v44 = vor.u32 %v3341_v29, %v2679_v30  ;;  %v3325_v23 = vld [vmem:[%s5185_s1 + $0x36c] sm:$0xf] }
  0x95   :  { %1485 = vmatpush.bf16.msra.mxu1 %v2742_v46  ;;  %1536 = vmatpush.bf16.msrb.mxu0 %v2378_v47  ;;  %v3337_v46 = vld [vmem:[%s5185_s1 + $0x3cc] sm:$0xf]  ;;  %v2538_v47 = vor.u32 %v3305_v35, %v2535_v37 }
  0x96   :  { %v2666_v61 = vor.u32 %v3337_v46, %v2663_v50  ;;  %v3289_v30 = vld [vmem:[%s5185_s1 + $0x24c] sm:$0xf] }
  0x97   :  { %1523 = vmatpush.bf16.msrb.mxu2 %v2250_v42  ;;  %1497 = vmatpush.bf16.msrb.mxu3 %v2886_v43  ;;  %v3405_v42 = vld [vmem:[%s5185_s1 + $0x5ec] sm:$0xf]  ;;  %v2935_v43 = vld [vmem:[%s5185_s1 + $0x5f8] sm:$0xf0] }
  0x98   :  { %v2938_v54 = vor.u32 %v3405_v42, %v2935_v43  ;;  %v3389_v32 = vld [vmem:[%s5185_s1 + $0x56c] sm:$0xf]  ;;  %v2599_v42 = vld [vmem:[%s5185_s1 + $0x358] sm:$0xf0] }
  0x99   :  { %1486 = vmatpush.bf16.msra.mxu1 %v2726_v62  ;;  %1537 = vmatpush.bf16.msrb.mxu0 %v2362_v63  ;;  %v2794_v62 = vor.u32 %v3369_v51, %v2791_v52  ;;  %v3333_v63 = vld [vmem:[%s5185_s1 + $0x3ac] sm:$0xf]  ;;  %v2855_v51 = vld [vmem:[%s5185_s1 + $0x558] sm:$0xf0]  ;;  %v4712_v52 = vld [vmem:[%s5187_s2] sm:$0xf] }
  0x9a   :  { %v2650_v10 = vor.u32 %v3333_v63, %v2647_v1  ;;  %v3353_v43 = vld [vmem:[%s5185_s1 + $0x44c] sm:$0xf]  ;;  %v2439_v1 = vld [vmem:[%s5185_s1 + $0x218] sm:$0xf0] }
  0x9b   :  { %1524 = vmatpush.bf16.msrb.mxu2 %v2234_v56  ;;  %1498 = vmatpush.bf16.msrb.mxu3 %v2870_v58  ;;  %v2519_v56 = vld [vmem:[%s5185_s1 + $0x2b8] sm:$0xf0]  ;;  %v3401_v58 = vld [vmem:[%s5185_s1 + $0x5cc] sm:$0xf] }
  0x9c   :  { %v2522_v0 = vor.u32 %v3301_v55, %v2519_v56  ;;  %v2922_v4 = vor.u32 %v3401_v58, %v2919_v59  ;;  %v3285_v46 = vld [vmem:[%s5185_s1 + $0x22c] sm:$0xf]  ;;  %v2583_v59 = vld [vmem:[%s5185_s1 + $0x338] sm:$0xf0] }
  0x9d   :  { %1487 = vmatpush.bf16.msra.mxu1 %v2710_v11  ;;  %1538 = vmatpush.bf16.msrb.mxu0 %v2346_v12  ;;  %v2778_v11 = vor.u32 %v3365_v2, %v2775_v3  ;;  %v3329_v12 = vld [vmem:[%s5185_s1 + $0x38c] sm:$0xf] }
  0x9e   :  { %v3385_v50 = vld [vmem:[%s5185_s1 + $0x54c] sm:$0xf] }
  0x9f   :  { %1525 = vmatpush.bf16.msrb.mxu2 %v2218_v6  ;;  %1499 = vmatpush.bf16.msrb.mxu3 %v2854_v7  ;;  %v2503_v6 = vld [vmem:[%s5185_s1 + $0x298] sm:$0xf0]  ;;  %v3397_v7 = vld [vmem:[%s5185_s1 + $0x5ac] sm:$0xf]  ;;  %v2858_v63 = vor.u32 %v3385_v50, %v2855_v51 }
  0xa0   :  { %v2506_v13 = vor.u32 %v3297_v5, %v2503_v6  ;;  %v2906_v16 = vor.u32 %v3397_v7, %v2903_v8  ;;  %v3317_v56 = vld [vmem:[%s5185_s1 + $0x32c] sm:$0xf]  ;;  %v2951_v6 = vld [vmem:[%s5185_s1 + $0x618] sm:$0xf0]  ;;  %v231_v7 = vperm.slane %v4712_v52, 0 }
  0xa1   :  { %1488 = vmatpush.bf16.msra.mxu1 %v2694_v26  ;;  %1539 = vmatpush.bf16.msrb.mxu0 %v2330_v27  ;;  %v3357_v26 = vld [vmem:[%s5185_s1 + $0x46c] sm:$0xf]  ;;  %v2743_v27 = vld [vmem:[%s5185_s1 + $0x478] sm:$0xf0] }
  0xa2   :  { %v2746_v37 = vor.u32 %v3357_v26, %v2743_v27  ;;  %v3381_v2 = vld [vmem:[%s5185_s1 + $0x52c] sm:$0xf] }
  0xa3   :  { %1526 = vmatpush.bf16.msrb.mxu2 %v2202_v19  ;;  %1500 = vmatpush.bf16.msrb.mxu3 %v2838_v22  ;;  %v2762_v22 = vor.u32 %v3361_v14, %v2759_v15  ;;  %v3409_v5 = vld [vmem:[%s5185_s1 + $0x60c] sm:$0xf]  ;;  %v2695_v15 = vld [vmem:[%s5185_s1 + $0x418] sm:$0xf0] }
  0xa4   :  { %1489 = vmatmul.bf16.vlgmr.msra.gmra.mxu1 %v3966_v34  ;;  %v3345_v14 = vld [vmem:[%s5185_s1 + $0x40c] sm:$0xf]  ;;  %v2954_v18 = vor.u32 %v3409_v5, %v2951_v6  ;;  %v3041_v6 = vld [vmem:[%s5188_s3 + $0xa0] sm:$0xf] }
  0xa5   :  { %1546 = vmatpush.bf16.msrb.mxu1 %v2554_v31  ;;  %1540 = vmatpush.bf16.msrb.mxu0 %v2314_v49  ;;  %v4647_v19 = vpop.f32.mrf.mxu0  ;;  %v4667_v29 = vpop.f32.mrf.mxu1  ;;  %v2471_v31 = vld [vmem:[%s5185_s1 + $0x258] sm:$0xf0]  ;;  %v2698_v27 = vor.u32 %v3345_v14, %v2695_v15  ;;  %v3431_v15 = vld [vmem:[%s5188_s3 + $0x94] sm:$0xf0] }
  0xa6   :  { %v2474_v40 = vor.u32 %v3289_v30, %v2471_v31  ;;  %v1257_v26 = vadd.f32 %v4647_v19, %v231_v7  ;;  %v3009_v31 = vld [vmem:[%s5188_s3 + $0x60] sm:$0xf]  ;;  %v3441_v19 = vld [vmem:[%s5188_s3 + $0xe4] sm:$0xf0] }
  0xa7   :  { %1527 = vmatpush.bf16.msrb.mxu2 %v2186_v36  ;;  %1501 = vmatpush.bf16.msrb.mxu3 %v2822_v41  ;;  %v2618_v36 = vor.u32 %v3325_v23, %v2615_v25  ;;  %v3081_v23 = vld [vmem:[%s5188_s3 + $0xf0] sm:$0xf]  ;;  %v3433_v7 = vld [vmem:[%s5188_s3 + $0xa4] sm:$0xf0] }
  0xa8   :  { %1541 = vmatmul.bf16.vlgmr.msrb.gmra.mxu0 %v3799_v9  ;;  %v2887_v9 = vld [vmem:[%s5185_s1 + $0x598] sm:$0xf0]  ;;  %v4681_v35 = vpop.f32.mrf.mxu2 }
  0xa9   :  { %1547 = vmatpush.bf16.msrb.mxu1 %v2538_v47  ;;  %1585 = vmatpush.bf16.msra.mxu0 %v2938_v54  ;;  %v2890_v28 = vor.u32 %v3393_v20, %v2887_v9  ;;  %v4686_v41 = vpop.f32.mrf.mxu3  ;;  %v2455_v47 = vld [vmem:[%s5185_s1 + $0x238] sm:$0xf0]  ;;  %v2602_v54 = vor.u32 %v3321_v38, %v2599_v42  ;;  %v3017_v20 = vld [vmem:[%s5188_s3 + $0x70] sm:$0xf]  ;;  %v3427_v9 = vld [vmem:[%s5188_s3 + $0x74] sm:$0xf0]  ;;  %v1270_v38 = vadd.f32 %v4667_v29, %v1257_v26 }
  0xaa   :  { %1502 = vmatmul.bf16.vlgmr.msrb.gmra.mxu3 %v3977_v39  ;;  %1528 = vmatmul.bf16.vlgmr.msrb.gmra.mxu2 %v3769_v57  ;;  %v2631_v57 = vld [vmem:[%s5185_s1 + $0x398] sm:$0xf0]  ;;  %v2458_v58 = vor.u32 %v3285_v46, %v2455_v47  ;;  %v3001_v42 = vld [vmem:[%s5188_s3 + $0x50] sm:$0xf]  ;;  %v3439_v29 = vld [vmem:[%s5188_s3 + $0xd4] sm:$0xf0] }
  0xab   :  { %1559 = vmatpush.bf16.msra.mxu3 %v2682_v44  ;;  %1572 = vmatpush.bf16.msra.mxu2 %v2810_v45  ;;  %v2634_v21 = vor.u32 %v3329_v12, %v2631_v57  ;;  %v2727_v44 = vld [vmem:[%s5185_s1 + $0x458] sm:$0xf0]  ;;  %v2874_v45 = vor.u32 %v3389_v32, %v2871_v33  ;;  %v3313_v12 = vld [vmem:[%s5185_s1 + $0x30c] sm:$0xf]  ;;  %v3425_v32 = vld [vmem:[%s5188_s3 + $0x64] sm:$0xf0] }
  0xac   :  { %v2730_v55 = vor.u32 %v3353_v43, %v2727_v44  ;;  %v2567_v57 = vld [vmem:[%s5185_s1 + $0x318] sm:$0xf0]  ;;  %v3423_v43 = vld [vmem:[%s5188_s3 + $0x54] sm:$0xf0]  ;;  %v3421_v47 = vld [vmem:[%s5188_s3 + $0x44] sm:$0xf0] }
  0xad   :  { %1548 = vmatpush.bf16.msrb.mxu1 %v2522_v0  ;;  %1586 = vmatpush.bf16.msra.mxu0 %v2922_v4  ;;  %v1258_v49 = vpop.f32.mrf.mxu0  ;;  %v3281_v0 = vld [vmem:[%s5185_s1 + $0x20c] sm:$0xf]  ;;  %v1271_v3 = vpop.f32.mrf.mxu1  ;;  %v2839_v4 = vld [vmem:[%s5185_s1 + $0x538] sm:$0xf0]  ;;  %v2570_v25 = vor.u32 %v3313_v12, %v2567_v57  ;;  %v3002_v46 = vor.u32 %v3423_v43, %v3001_v42  ;;  %v2969_v12 = vld [vmem:[%s5188_s3 + $0x10] sm:$0xf]  ;;  %v3042_v57 = vor.u32 %v3433_v7, %v3041_v6 }
  0xae   :  { %v2842_v17 = vor.u32 %v3381_v2, %v2839_v4  ;;  %v3442_v26 = vld [vmem:[%s5188_s3 + $0xf4] sm:$0xf]  ;;  %v3416_v7 = vld [vmem:[%s5188_s3 + $0x24] sm:$0xf] }
  0xaf   :  { %1560 = vmatpush.bf16.msra.mxu3 %v2666_v61  ;;  %1573 = vmatpush.bf16.msra.mxu2 %v2794_v62  ;;  %v3349_v61 = vld [vmem:[%s5185_s1 + $0x42c] sm:$0xf]  ;;  %v2711_v62 = vld [vmem:[%s5185_s1 + $0x438] sm:$0xf0] }
  0xb0   :  { %v1284_v8 = vpop.f32.mrf.mxu2 }
  0xb1   :  { %1549 = vmatpush.bf16.msrb.mxu1 %v2506_v13  ;;  %1587 = vmatpush.bf16.msra.mxu0 %v2906_v16  ;;  %v2442_v13 = vor.u32 %v3281_v0, %v2439_v1  ;;  %v1297_v16 = vpop.f32.mrf.mxu3  ;;  %v2977_v0 = vld [vmem:[%s5188_s3 + $0x20] sm:$0xf]  ;;  %v3417_v1 = vld [vmem:[%s5188_s3 + $0x24] sm:$0xf0] }
  0xb3   :  { %1561 = vmatpush.bf16.msra.mxu3 %v2650_v10  ;;  %1574 = vmatpush.bf16.msra.mxu2 %v2778_v11  ;;  %v2586_v10 = vor.u32 %v3317_v56, %v2583_v59  ;;  %v2714_v11 = vor.u32 %v3349_v61, %v2711_v62  ;;  %v2985_v56 = vld [vmem:[%s5188_s3 + $0x30] sm:$0xf] }
  0xb4   :  { %v3049_v62 = vld [vmem:[%s5188_s3 + $0xb0] sm:$0xf] }
  0xb5   :  { %1550 = vmatpush.bf16.msrb.mxu1 %v2490_v24  ;;  %1588 = vmatpush.bf16.msra.mxu0 %v2890_v28  ;;  %v3443_v24 = vld [vmem:[%s5188_s3 + $0xf4] sm:$0xf0]  ;;  %v3018_v28 = vor.u32 %v3427_v9, %v3017_v20  ;;  %v3426_v20 = vld [vmem:[%s5188_s3 + $0x74] sm:$0xf]  ;;  %v3019_v9 = vld [vmem:[%s5188_s3 + $0x78] sm:$0xf0] }
  0xb6   :  { %v3082_v33 = vor.u32 %v3443_v24, %v3081_v23  ;;  %v3025_v24 = vld [vmem:[%s5188_s3 + $0x80] sm:$0xf] }
  0xb7   :  { %1562 = vmatpush.bf16.msra.mxu3 %v2634_v21  ;;  %1575 = vmatpush.bf16.msra.mxu2 %v2762_v22  ;;  %v3377_v21 = vld [vmem:[%s5185_s1 + $0x50c] sm:$0xf]  ;;  %v2823_v22 = vld [vmem:[%s5185_s1 + $0x518] sm:$0xf0] }
  0xb8   :  { %v2826_v30 = vor.u32 %v3377_v21, %v2823_v22 }
  0xb9   :  { %1551 = vmatpush.bf16.msrb.mxu1 %v2474_v40  ;;  %1589 = vmatpush.bf16.msra.mxu0 %v2874_v45  ;;  %v3010_v40 = vor.u32 %v3425_v32, %v3009_v31  ;;  %v1283_v45 = vadd.f32 %v4681_v35, %v1270_v38  ;;  %v3022_v31 = vor.u32 %v3426_v20, %v3019_v9  ;;  %v3440_v38 = vld [vmem:[%s5188_s3 + $0xe4] sm:$0xf]  ;;  %v3414_v20 = vld [vmem:[%s5188_s3 + $0x14] sm:$0xf]  ;;  %v2971_v9 = vld [vmem:[%s5188_s3 + $0x18] sm:$0xf0] }
  0xbb   :  { %1563 = vmatpush.bf16.msra.mxu3 %v2618_v36  ;;  %1576 = vmatpush.bf16.msra.mxu2 %v2746_v37  ;;  %v3073_v36 = vld [vmem:[%s5188_s3 + $0xe0] sm:$0xf]  ;;  %v1334_v37 = vpop.f32.mrf.mxu2 }
  0xbc   :  { %v3074_v44 = vor.u32 %v3441_v19, %v3073_v36  ;;  %v3424_v36 = vld [vmem:[%s5188_s3 + $0x64] sm:$0xf]  ;;  %v3011_v19 = vld [vmem:[%s5188_s3 + $0x68] sm:$0xf0] }
  0xbd   :  { %1552 = vmatpush.bf16.msrb.mxu1 %v2458_v58  ;;  %1590 = vmatpush.bf16.msra.mxu0 %v2858_v63  ;;  %v3419_v58 = vld [vmem:[%s5188_s3 + $0x34] sm:$0xf0]  ;;  %v3014_v43 = vor.u32 %v3424_v36, %v3011_v19  ;;  %v3027_v19 = vld [vmem:[%s5188_s3 + $0x88] sm:$0xf0] }
  0xbe   :  { %v2986_v63 = vor.u32 %v3419_v58, %v2985_v56  ;;  %v232_v56 = vperm.slane %v4712_v52, 1 }
  0xbf   :  { %1564 = vmatpush.bf16.msra.mxu3 %v2602_v54  ;;  %1577 = vmatpush.bf16.msra.mxu2 %v2730_v55  ;;  %v1296_v54 = vadd.f32 %v4686_v41, %v1283_v45  ;;  %v3435_v41 = vld [vmem:[%s5188_s3 + $0xb4] sm:$0xf0]  ;;  %v3438_v45 = vld [vmem:[%s5188_s3 + $0xd4] sm:$0xf] }
  0xc0   :  { %v3050_v2 = vor.u32 %v3435_v41, %v3049_v62  ;;  %v2987_v62 = vld [vmem:[%s5188_s3 + $0x38] sm:$0xf0] }
  0xc1   :  { %1553 = vmatpush.bf16.msrb.mxu1 %v2442_v13  ;;  %1591 = vmatpush.bf16.msra.mxu0 %v2842_v17  ;;  %v1308_v50 = vpop.f32.mrf.mxu0  ;;  %v1321_v35 = vpop.f32.mrf.mxu1  ;;  %v3415_v13 = vld [vmem:[%s5188_s3 + $0x14] sm:$0xf0]  ;;  %v2961_v17 = vld [vmem:[%s5188_s3] sm:$0xf] }
  0xc2   :  { %v1309_v61 = vadd.f32 %v1308_v50, %v1296_v54  ;;  %v2970_v16 = vor.u32 %v3415_v13, %v2969_v12  ;;  %v3432_v13 = vld [vmem:[%s5188_s3 + $0xa4] sm:$0xf] }
  0xc3   :  { %1565 = vmatpush.bf16.msra.mxu3 %v2586_v10  ;;  %1578 = vmatpush.bf16.msra.mxu2 %v2714_v11  ;;  %v1336_v51 = vpop.f32.mrf.mxu2  ;;  %v2978_v10 = vor.u32 %v3417_v1, %v2977_v0  ;;  %v3457_v0 = vld [vmem:[%s5188_s3 + $0x164] sm:$0xf0]  ;;  %v3434_v1 = vld [vmem:[%s5188_s3 + $0xb4] sm:$0xf] }
  0xc4   :  { %1554 = vmatmul.bf16.vlgmr.msrb.gmra.mxu1 %v3758_v53  ;;  %v3065_v53 = vld [vmem:[%s5188_s3 + $0xd0] sm:$0xf]  ;;  %v1322_v3 = vadd.f32 %v1321_v35, %v1309_v61  ;;  %v3459_v51 = vld [vmem:[%s5188_s3 + $0x174] sm:$0xf0] }
  0xc5   :  { %1605 = vmatpush.bf16.msra.mxu1 %v2954_v18  ;;  %1592 = vmatpush.bf16.msra.mxu0 %v2826_v30  ;;  %v3066_v49 = vor.u32 %v3439_v29, %v3065_v53  ;;  %v3413_v18 = vld [vmem:[%s5188_s3 + $0x4] sm:$0xf0]  ;;  %v3003_v53 = vld [vmem:[%s5188_s3 + $0x58] sm:$0xf0]  ;;  %v3145_v35 = vld [vmem:[%s5188_s3 + $0x170] sm:$0xf] }
  0xc6   :  { %v1335_v14 = vadd.f32 %v1334_v37, %v1322_v3 }
  0xc7   :  { %1566 = vmatpush.bf16.msra.mxu3 %v2570_v25  ;;  %1579 = vmatpush.bf16.msra.mxu2 %v2698_v27  ;;  %v3429_v25 = vld [vmem:[%s5188_s3 + $0x84] sm:$0xf0]  ;;  %v3083_v27 = vld [vmem:[%s5188_s3 + $0xf8] sm:$0xf0] }
  0xc8   :  { %1593 = vmatmul.bf16.vlgmr.msra.gmra.mxu0 %v3977_v39  ;;  %v3437_v39 = vld [vmem:[%s5188_s3 + $0xc4] sm:$0xf0]  ;;  %v1615_v22 = vmul.f32 0.2, %v1335_v14  ;;  %vm1611_vm1 = vcmp.gt.f32.partialorder %v1335_v14, 0.0  ;;  %v3026_v32 = vor.u32 %v3429_v25, %v3025_v24  ;;  %v3086_v37 = vor.u32 %v3442_v26, %v3083_v27 }
  0xc9   :  { %2030 = vmatpush.bf16.msrb.mxu1 %v3082_v33  ;;  %v4837_v4 = vpop.f32.mrf.mxu3  ;;  %v1310_v5 = vpop.f32.mrf.mxu0  ;;  %v3035_v24 = vld [vmem:[%s5188_s3 + $0x98] sm:$0xf0]  ;;  %v3121_v25 = vld [vmem:[%s5188_s3 + $0x140] sm:$0xf]  ;;  %v3453_v26 = vld [vmem:[%s5188_s3 + $0x144] sm:$0xf0]  ;;  %v2974_v27 = vor.u32 %v3414_v20, %v2971_v9 }
  0xca   :  { %1567 = vmatmul.bf16.vlgmr.msra.gmra.mxu3 %v3771_v60  ;;  %1580 = vmatmul.bf16.vlgmr.msra.gmra.mxu2 %v3966_v34  ;;  %v2993_v60 = vld [vmem:[%s5188_s3 + $0x40] sm:$0xf]  ;;  %v1323_v8 = vpop.f32.mrf.mxu1  ;;  %v1619_v33 = vsel %vm1611_vm1, %v1335_v14, %v1615_v22  ;;  %v1348_v6 = vadd.f32 %v4837_v4, %v232_v56  ;;  %v3043_v4 = vld [vmem:[%s5188_s3 + $0xa8] sm:$0xf0]  ;;  %v3129_v14 = vld [vmem:[%s5188_s3 + $0x150] sm:$0xf] }
  0xcb   :  { %2017 = vmatpush.bf16.msrb.mxu3 %v3018_v28  ;;  %v3057_v34 = vld [vmem:[%s5188_s3 + $0xc0] sm:$0xf]  ;;  %v2994_v55 = vor.u32 %v3421_v47, %v2993_v60  ;;  %v2962_v28 = vor.u32 %v3413_v18, %v2961_v17  ;;  %v4897_v42 = vpack.c.bf16 %v1619_v33, %v1619_v33  ;;  %v3420_v47 = vld [vmem:[%s5188_s3 + $0x44] sm:$0xf]  ;;  %v2979_v8 = vld [vmem:[%s5188_s3 + $0x28] sm:$0xf0]  ;;  %v3046_v22 = vor.u32 %v3432_v13, %v3043_v4 }
  0xcc   :  { %v3058_v59 = vor.u32 %v3437_v39, %v3057_v34  ;;  %v3436_v34 = vld [vmem:[%s5188_s3 + $0xc4] sm:$0xf]  ;;  %v3059_v39 = vld [vmem:[%s5188_s3 + $0xc8] sm:$0xf0]  ;;  %v3089_v56 = vld [vmem:[%s5188_s3 + $0x100] sm:$0xf] }
  0xcd   :  { %2031 = vmatpush.bf16.msrb.mxu1 %v3074_v44  ;;  %v4847_v11 = vpop.f32.mrf.mxu2  ;;  %v3422_v44 = vld [vmem:[%s5188_s3 + $0x54] sm:$0xf]  ;;  %v3062_v41 = vor.u32 %v3436_v34, %v3059_v39  ;;  %v3428_v33 = vld [vmem:[%s5188_s3 + $0x84] sm:$0xf]  ;;  %v3201_v4 = vld [vmem:[%s5188_s3 + $0x1e0] sm:$0xf] }
  0xce   :  { %v3006_v60 = vor.u32 %v3422_v44, %v3003_v53  ;;  %v1361_v18 = vadd.f32 %v4847_v11, %v1348_v6  ;;  %v3105_v44 = vld [vmem:[%s5188_s3 + $0x120] sm:$0xf]  ;;  %v3449_v53 = vld [vmem:[%s5188_s3 + $0x124] sm:$0xf0]  ;;  %v3209_v6 = vld [vmem:[%s5188_s3 + $0x1f0] sm:$0xf] }
  0xcf   :  { %2018 = vmatpush.bf16.msrb.mxu3 %v3010_v40  ;;  %v3075_v40 = vld [vmem:[%s5188_s3 + $0xe8] sm:$0xf0] }
  0xd0   :  { %v3078_v29 = vor.u32 %v3440_v38, %v3075_v40  ;;  %v3451_v38 = vld [vmem:[%s5188_s3 + $0x134] sm:$0xf0]  ;;  %v3123_v20 = vld [vmem:[%s5188_s3 + $0x148] sm:$0xf0] }
  0xd1   :  { %2032 = vmatpush.bf16.msrb.mxu1 %v3066_v49  ;;  %v1349_v23 = vpop.f32.mrf.mxu3  ;;  %v2995_v49 = vld [vmem:[%s5188_s3 + $0x48] sm:$0xf0] }
  0xd2   :  { %v2998_v58 = vor.u32 %v3420_v47, %v2995_v49  ;;  %v3430_v23 = vld [vmem:[%s5188_s3 + $0x94] sm:$0xf]  ;;  %v3106_v47 = vor.u32 %v3449_v53, %v3105_v44  ;;  %v3097_v49 = vld [vmem:[%s5188_s3 + $0x110] sm:$0xf]  ;;  %v3099_v53 = vld [vmem:[%s5188_s3 + $0x118] sm:$0xf0] }
  0xd3   :  { %2019 = vmatpush.bf16.msrb.mxu3 %v3002_v46  ;;  %v3067_v46 = vld [vmem:[%s5188_s3 + $0xd8] sm:$0xf0]  ;;  %v3446_v44 = vld [vmem:[%s5188_s3 + $0x114] sm:$0xf] }
  0xd4   :  { %2958 = vmatmul.msk.bf16.vlgmr.msra.gmra.mxu1 %vm1243_vm0, %v3878_v48  ;;  %v3033_v48 = vld [vmem:[%s5188_s3 + $0x90] sm:$0xf]  ;;  %v3070_v50 = vor.u32 %v3438_v45, %v3067_v46 }
  0xd5   :  { %2033 = vmatpush.bf16.msrb.mxu1 %v3058_v59  ;;  %v3034_v21 = vor.u32 %v3431_v15, %v3033_v48  ;;  %v1362_v30 = vpop.f32.mrf.mxu2  ;;  %v3418_v59 = vld [vmem:[%s5188_s3 + $0x34] sm:$0xf]  ;;  %v3455_v48 = vld [vmem:[%s5188_s3 + $0x154] sm:$0xf0] }
  0xd6   :  { %v2990_v5 = vor.u32 %v3418_v59, %v2987_v62  ;;  %v3130_v17 = vor.u32 %v3455_v48, %v3129_v14  ;;  %v3412_v30 = vld [vmem:[%s5188_s3 + $0x4] sm:$0xf]  ;;  %v3458_v59 = vld [vmem:[%s5188_s3 + $0x174] sm:$0xf] }
  0xd7   :  { %2020 = vmatpush.bf16.msrb.mxu3 %v2994_v55  ;;  %v3146_v55 = vor.u32 %v3459_v51, %v3145_v35 }
  0xd9   :  { %2034 = vmatpush.bf16.msrb.mxu1 %v3050_v2  ;;  %2043 = vmatpush.bf16.msrb.mxu2 %v3146_v55  ;;  %v3051_v2 = vld [vmem:[%s5188_s3 + $0xb8] sm:$0xf0] }
  0xdb   :  { %2021 = vmatpush.bf16.msrb.mxu3 %v2986_v63  ;;  %v3137_v63 = vld [vmem:[%s5188_s3 + $0x160] sm:$0xf] }
  0xdc   :  { %v3138_v3 = vor.u32 %v3457_v0, %v3137_v63  ;;  %v3139_v63 = vld [vmem:[%s5188_s3 + $0x168] sm:$0xf0] }
  0xdd   :  { %2035 = vmatpush.bf16.msrb.mxu1 %v3042_v57 }
  0xde   :  { %2044 = vmatpush.bf16.msrb.mxu2 %v3138_v3 }
  0xdf   :  { %2022 = vmatpush.bf16.msrb.mxu3 %v2978_v10  ;;  %v3054_v10 = vor.u32 %v3434_v1, %v3051_v2 }
  0xe1   :  { %2036 = vmatpush.bf16.msrb.mxu1 %v3034_v21  ;;  %v1373_v54 = vpop.f32.mrf.mxu0  ;;  %v1386_v61 = vpop.f32.mrf.mxu1 }
  0xe2   :  { %2045 = vmatpush.bf16.msrb.mxu2 %v3130_v17  ;;  %v1374_v11 = vadd.f32 %v1373_v54, %v1361_v18  ;;  %v3452_v18 = vld [vmem:[%s5188_s3 + $0x144] sm:$0xf] }
  0xe3   :  { %2023 = vmatpush.bf16.msrb.mxu3 %v2970_v16  ;;  %v2982_v16 = vor.u32 %v3416_v7, %v2979_v8  ;;  %v3475_v7 = vld [vmem:[%s5188_s3 + $0x1f4] sm:$0xf0]  ;;  %v3126_v9 = vor.u32 %v3452_v18, %v3123_v20  ;;  %v3187_v18 = vld [vmem:[%s5188_s3 + $0x1c8] sm:$0xf0] }
  0xe4   :  { %v1387_v40 = vadd.f32 %v1386_v61, %v1374_v11  ;;  %v3210_v8 = vor.u32 %v3475_v7, %v3209_v6  ;;  %v3115_v11 = vld [vmem:[%s5188_s3 + $0x138] sm:$0xf0]  ;;  %v3203_v6 = vld [vmem:[%s5188_s3 + $0x1e8] sm:$0xf0] }
  0xe5   :  { %2037 = vmatpush.bf16.msrb.mxu1 %v3026_v32  ;;  %v3038_v32 = vor.u32 %v3430_v23, %v3035_v24  ;;  %v3450_v24 = vld [vmem:[%s5188_s3 + $0x134] sm:$0xf] }
  0xe6   :  { %2056 = vmatpush.bf16.msrb.mxu0 %v3210_v8 }
  0xe7   :  { %2024 = vmatpush.bf16.msrb.mxu3 %v2962_v28  ;;  %v3122_v28 = vor.u32 %v3453_v26, %v3121_v25  ;;  %v3118_v25 = vor.u32 %v3450_v24, %v3115_v11  ;;  %v3185_v26 = vld [vmem:[%s5188_s3 + $0x1c0] sm:$0xf]  ;;  %v3179_v24 = vld [vmem:[%s5188_s3 + $0x1b8] sm:$0xf0] }
  0xe9   :  { %2082 = vmatpush.bf16.msra.mxu1 %v3086_v37  ;;  %v1399_v12 = vpop.f32.mrf.mxu3  ;;  %v1375_v57 = vpop.f32.mrf.mxu0  ;;  %2046 = vmatpush.bf16.msrb.mxu2 %v3122_v28  ;;  %v3113_v37 = vld [vmem:[%s5188_s3 + $0x130] sm:$0xf]  ;;  %v3448_v28 = vld [vmem:[%s5188_s3 + $0x124] sm:$0xf] }
  0xea   :  { %2025 = vmatmul.bf16.vlgmr.msrb.gmra.mxu3 %v4897_v42  ;;  %v1388_v21 = vpop.f32.mrf.mxu1  ;;  %v1400_v46 = vadd.f32 %v1399_v12, %v1387_v40  ;;  %v3131_v12 = vld [vmem:[%s5188_s3 + $0x158] sm:$0xf0]  ;;  %v3473_v57 = vld [vmem:[%s5188_s3 + $0x1e4] sm:$0xf0] }
  0xeb   :  { %2069 = vmatpush.bf16.msra.mxu3 %v3022_v31  ;;  %v2963_v31 = vld [vmem:[%s5188_s3 + $0x8] sm:$0xf0]  ;;  %v3193_v21 = vld [vmem:[%s5188_s3 + $0x1d0] sm:$0xf] }
  0xed   :  { %2083 = vmatpush.bf16.msra.mxu1 %v3078_v29  ;;  %v1412_v15 = vpop.f32.mrf.mxu2  ;;  %v2966_v29 = vor.u32 %v3412_v30, %v2963_v31 }
  0xee   :  { %v1413_v34 = vadd.f32 %v1412_v15, %v1400_v46  ;;  %v3202_v15 = vor.u32 %v3473_v57, %v3201_v4  ;;  %v3169_v46 = vld [vmem:[%s5188_s3 + $0x1a0] sm:$0xf]  ;;  %v3470_v4 = vld [vmem:[%s5188_s3 + $0x1d4] sm:$0xf]  ;;  %v3195_v57 = vld [vmem:[%s5188_s3 + $0x1d8] sm:$0xf0] }
  0xef   :  { %2070 = vmatpush.bf16.msra.mxu3 %v3014_v43  ;;  %v3114_v43 = vor.u32 %v3451_v38, %v3113_v37  ;;  %v233_v38 = vperm.slane %v4712_v52, 2 }
  0xf0   :  { %2057 = vmatpush.bf16.msrb.mxu0 %v3202_v15 }
  0xf1   :  { %2084 = vmatpush.bf16.msra.mxu1 %v3070_v50  ;;  %v1401_v36 = vpop.f32.mrf.mxu3  ;;  %2047 = vmatpush.bf16.msrb.mxu2 %v3114_v43  ;;  %v3447_v50 = vld [vmem:[%s5188_s3 + $0x114] sm:$0xf0] }
  0xf2   :  { %v3098_v35 = vor.u32 %v3447_v50, %v3097_v49  ;;  %v3177_v36 = vld [vmem:[%s5188_s3 + $0x1b0] sm:$0xf] }
  0xf3   :  { %2071 = vmatpush.bf16.msra.mxu3 %v3006_v60  ;;  %v3030_v60 = vor.u32 %v3428_v33, %v3027_v19  ;;  %v3107_v33 = vld [vmem:[%s5188_s3 + $0x128] sm:$0xf0]  ;;  %v3467_v19 = vld [vmem:[%s5188_s3 + $0x1b4] sm:$0xf0] }
  0xf4   :  { %v3110_v37 = vor.u32 %v3448_v28, %v3107_v33  ;;  %v3178_v43 = vor.u32 %v3467_v19, %v3177_v36  ;;  %v3462_v28 = vld [vmem:[%s5188_s3 + $0x194] sm:$0xf]  ;;  %v3460_v33 = vld [vmem:[%s5188_s3 + $0x184] sm:$0xf]  ;;  %v3155_v36 = vld [vmem:[%s5188_s3 + $0x188] sm:$0xf0] }
  0xf5   :  { %2085 = vmatpush.bf16.msra.mxu1 %v3062_v41  ;;  %v1414_v45 = vpop.f32.mrf.mxu2  ;;  %2048 = vmatpush.bf16.msrb.mxu2 %v3106_v47  ;;  %v3456_v41 = vld [vmem:[%s5188_s3 + $0x164] sm:$0xf] }
  0xf6   :  { %v3142_v3 = vor.u32 %v3456_v41, %v3139_v63  ;;  %v3211_v41 = vld [vmem:[%s5188_s3 + $0x1f8] sm:$0xf0] }
  0xf7   :  { %2072 = vmatpush.bf16.msra.mxu3 %v2998_v58  ;;  %v3445_v58 = vld [vmem:[%s5188_s3 + $0x104] sm:$0xf0] }
  0xf8   :  { %v3090_v62 = vor.u32 %v3445_v58, %v3089_v56 }
  0xf9   :  { %2086 = vmatpush.bf16.msra.mxu1 %v3054_v10  ;;  %v1425_v39 = vpop.f32.mrf.mxu3  ;;  %2049 = vmatpush.bf16.msrb.mxu2 %v3098_v35  ;;  %v3454_v10 = vld [vmem:[%s5188_s3 + $0x154] sm:$0xf]  ;;  %v3161_v35 = vld [vmem:[%s5188_s3 + $0x190] sm:$0xf] }
  0xfa   :  { %v1426_v51 = vadd.f32 %v1425_v39, %v1413_v34  ;;  %v3134_v13 = vor.u32 %v3454_v10, %v3131_v12  ;;  %v3444_v34 = vld [vmem:[%s5188_s3 + $0x104] sm:$0xf]  ;;  %v3091_v39 = vld [vmem:[%s5188_s3 + $0x108] sm:$0xf0] }
  0xfb   :  { %2073 = vmatpush.bf16.msra.mxu3 %v2990_v5 }
  0xfc   :  { %vm1612_vm2 = vcmp.gt.f32.partialorder %v1426_v51, 0.0  ;;  %v1616_v54 = vmul.f32 0.2, %v1426_v51 }
  0xfd   :  { %2087 = vmatpush.bf16.msra.mxu1 %v3046_v22  ;;  %2050 = vmatpush.bf16.msrb.mxu2 %v3090_v62  ;;  %v3471_v22 = vld [vmem:[%s5188_s3 + $0x1d4] sm:$0xf0] }
  0xfe   :  { %v1620_v55 = vsel %vm1612_vm2, %v1426_v51, %v1616_v54  ;;  %v3194_v23 = vor.u32 %v3471_v22, %v3193_v21  ;;  %v3094_v51 = vor.u32 %v3444_v34, %v3091_v39  ;;  %v3463_v54 = vld [vmem:[%s5188_s3 + $0x194] sm:$0xf0] }
  0xff   :  { %2074 = vmatpush.bf16.msra.mxu3 %v2982_v16  ;;  %v1624_v61 = vpack.c.bf16 %v1620_v55, %v1620_v55  ;;  %v3162_v56 = vor.u32 %v3463_v54, %v3161_v35 }
 0x100   :  { %2058 = vmatpush.bf16.msrb.mxu0 %v3194_v23  ;;  %v3466_v23 = vld [vmem:[%s5188_s3 + $0x1b4] sm:$0xf] }
 0x101   :  { %2088 = vmatpush.bf16.msra.mxu1 %v3038_v32  ;;  %v1427_v1 = vpop.f32.mrf.mxu3  ;;  %v5036_v2 = vpop.f32.mrf.mxu0  ;;  %v3182_v11 = vor.u32 %v3466_v23, %v3179_v24 }
 0x102   :  { %2038 = vmatmul.bf16.vlgmr.msrb.gmra.mxu1 %v1624_v61  ;;  %v1438_v5 = vpop.f32.mrf.mxu1 }
 0x103   :  { %2075 = vmatpush.bf16.msra.mxu3 %v2974_v27  ;;  %v3469_v27 = vld [vmem:[%s5188_s3 + $0x1c4] sm:$0xf0]  ;;  %v1439_v45 = vadd.f32 %v1438_v5, %v233_v38  ;;  %v3472_v5 = vld [vmem:[%s5188_s3 + $0x1e4] sm:$0xf]  ;;  %v3158_v38 = vor.u32 %v3460_v33, %v3155_v36 }
 0x104   :  { %v3186_v32 = vor.u32 %v3469_v27, %v3185_v26  ;;  %v3206_v8 = vor.u32 %v3472_v5, %v3203_v6  ;;  %v3171_v26 = vld [vmem:[%s5188_s3 + $0x1a8] sm:$0xf0] }
 0x105   :  { %2089 = vmatpush.bf16.msra.mxu1 %v3030_v60  ;;  %v3465_v60 = vld [vmem:[%s5188_s3 + $0x1a4] sm:$0xf0] }
 0x106   :  { %2059 = vmatpush.bf16.msrb.mxu0 %v3186_v32  ;;  %v3170_v49 = vor.u32 %v3465_v60, %v3169_v46 }
 0x107   :  { %2076 = vmatpush.bf16.msra.mxu3 %v2966_v29  ;;  %v3102_v29 = vor.u32 %v3446_v44, %v3099_v53 }
 0x109   :  { %v1466_v48 = vpop.f32.mrf.mxu0 }
 0x10a   :  { %2077 = vmatmul.bf16.vlgmr.msra.gmra.mxu3 %v4897_v42  ;;  %v3147_v42 = vld [vmem:[%s5188_s3 + $0x178] sm:$0xf0]  ;;  %v1440_v17 = vpop.f32.mrf.mxu1  ;;  %2060 = vmatpush.bf16.msrb.mxu0 %v3178_v43 }
 0x10b   :  { %v3150_v0 = vor.u32 %v3458_v59, %v3147_v42  ;;  %v3153_v59 = vld [vmem:[%s5188_s3 + $0x180] sm:$0xf]  ;;  %v3474_v42 = vld [vmem:[%s5188_s3 + $0x1f4] sm:$0xf]  ;;  %v3468_v17 = vld [vmem:[%s5188_s3 + $0x1c4] sm:$0xf] }
 0x10c   :  { %v3214_v63 = vor.u32 %v3474_v42, %v3211_v41  ;;  %v3190_v21 = vor.u32 %v3468_v17, %v3187_v18 }
 0x10d   :  { %2095 = vmatpush.bf16.msra.mxu2 %v3150_v0  ;;  %v1451_v14 = vpop.f32.mrf.mxu3  ;;  %v1477_v16 = vpop.f32.mrf.mxu2 }
 0x10e   :  { %v1452_v50 = vadd.f32 %v1451_v14, %v1439_v45  ;;  %2061 = vmatpush.bf16.msrb.mxu0 %v3170_v49  ;;  %v3198_v14 = vor.u32 %v3470_v4, %v3195_v57 }
 0x110   :  { %v1465_v58 = vadd.f32 %v5036_v2, %v1452_v50 }
 0x111   :  { %2096 = vmatpush.bf16.msra.mxu2 %v3142_v3  ;;  %v1516_v31 = vpop.f32.mrf.mxu0 }
 0x112   :  { %2090 = vmatmul.bf16.vlgmr.msra.gmra.mxu1 %v1624_v61  ;;  %2062 = vmatpush.bf16.msrb.mxu0 %v3162_v56  ;;  %v3461_v61 = vld [vmem:[%s5188_s3 + $0x184] sm:$0xf0]  ;;  %v1478_v0 = vadd.f32 %v1477_v16, %v1465_v58 }
 0x113   :  { %v3154_v62 = vor.u32 %v3461_v61, %v3153_v59  ;;  %v1691_v59 = vld [vmem:[%s5189_s4] sm:$0x3] }
 0x114   :  { %v1693_v61 = vperm.slane %v1691_v59, 0 }
 0x115   :  { %2097 = vmatpush.bf16.msra.mxu2 %v3134_v13  ;;  %v1453_v30 = vpop.f32.mrf.mxu3  ;;  %v1479_v40 = vpop.f32.mrf.mxu2 }
 0x116   :  { %2063 = vmatpush.bf16.msrb.mxu0 %v3154_v62  ;;  %v3163_v30 = vld [vmem:[%s5188_s3 + $0x198] sm:$0xf0] }
 0x117   :  { %v3166_v32 = vor.u32 %v3462_v28, %v3163_v30 }
 0x119   :  { %2098 = vmatpush.bf16.msra.mxu2 %v3126_v9  ;;  %v1518_v47 = vpop.f32.mrf.mxu0 }
 0x11a   :  { %2108 = vmatpush.bf16.msra.mxu0 %v3214_v63 }
 0x11d   :  { %2099 = vmatpush.bf16.msra.mxu2 %v3118_v25  ;;  %v3464_v25 = vld [vmem:[%s5188_s3 + $0x1a4] sm:$0xf] }
 0x11e   :  { %2109 = vmatpush.bf16.msra.mxu0 %v3206_v8  ;;  %v3174_v27 = vor.u32 %v3464_v25, %v3171_v26 }
 0x121   :  { %2100 = vmatpush.bf16.msra.mxu2 %v3110_v37  ;;  %v1490_v55 = vpop.f32.mrf.mxu1 }
 0x122   :  { %v1491_v2 = vadd.f32 %v1490_v55, %v1478_v0  ;;  %2110 = vmatpush.bf16.msra.mxu0 %v3198_v14  ;;  %v2127_v14 = vld [vmem:[%s5191_s5] sm:$0x3] }
 0x125   :  { %2101 = vmatpush.bf16.msra.mxu2 %v3102_v29  ;;  %v1542_v1 = vpop.f32.mrf.mxu0 }
 0x126   :  { %2111 = vmatpush.bf16.msra.mxu0 %v3190_v21 }
 0x129   :  { %2102 = vmatpush.bf16.msra.mxu2 %v3094_v51  ;;  %v1492_v3 = vpop.f32.mrf.mxu1 }
 0x12a   :  { %2112 = vmatpush.bf16.msra.mxu0 %v3182_v11 }
 0x12d   :  { %v1503_v7 = vpop.f32.mrf.mxu3  ;;  %v1529_v12 = vpop.f32.mrf.mxu2 }
 0x12e   :  { %v1504_v10 = vadd.f32 %v1503_v7, %v1491_v2  ;;  %v1544_v15 = vpop.f32.mrf.mxu0  ;;  %2113 = vmatpush.bf16.msra.mxu0 %v3174_v27  ;;  %v1694_v2 = vperm.slane %v1691_v59, 1 }
 0x130   :  { %v1517_v13 = vadd.f32 %v1516_v31, %v1504_v10  ;;  %v234_v31 = vperm.slane %v4712_v52, 3 }
 0x132   :  { %vm1613_vm3 = vcmp.gt.f32.partialorder %v1517_v13, 0.0  ;;  %v1617_v48 = vmul.f32 0.2, %v1517_v13  ;;  %v1530_v19 = vadd.f32 %v1529_v12, %v234_v31  ;;  %2114 = vmatpush.bf16.msra.mxu0 %v3166_v32 }
 0x134   :  { %v1621_v16 = vsel %vm1613_vm3, %v1517_v13, %v1617_v48  ;;  %v1543_v40 = vadd.f32 %v1542_v1, %v1530_v19  ;;  %v12_v13 = vstv %s5190_s6 }
 0x135   :  { %v1625_v20 = vpack.c.bf16 %v1621_v16, %v1621_v16  ;;  %v1505_v9 = vpop.f32.mrf.mxu3  ;;  %v1531_v22 = vpop.f32.mrf.mxu2  ;;  %13 = vst [vmem:[#allocation2] sm:$0x1] %v12_v13  ;;  %v2128_v16 = vunpack.c.l.bf16 %v2127_v14 }
 0x136   :  { %2115 = vmatpush.bf16.msra.mxu0 %v3158_v38 }
 0x137   :  { %2051 = vmatmul.bf16.vlgmr.msrb.gmra.mxu2 %v1625_v20  ;;  %v2130_v18 = vperm.slane %v2128_v16, 0 }
 0x139   :  { %v2134_v24 = vperm.slane %v2130_v18, 0 }
 0x13c   :  { %v3476_v33 = vld [vmem:[#allocation2] ss:$0 sm:$0xff] }
 0x141   :  { %v1555_v37 = vpop.f32.mrf.mxu1 }
 0x142   :  { %v1556_v44 = vadd.f32 %v1555_v37, %v1543_v40 }
 0x145   :  { %v1594_v43 = vpop.f32.mrf.mxu0 }
 0x147   :  { %2103 = vmatmul.bf16.vlgmr.msra.gmra.mxu2 %v1625_v20  ;;  %v2131_v20 = vperm.slane %v2128_v16, 2 }
 0x149   :  { %v1557_v52 = vpop.f32.mrf.mxu1  ;;  %v2135_v11 = vperm.slane %v2131_v20, 0 }
 0x14d   :  { %v1568_v53 = vpop.f32.mrf.mxu3  ;;  %v1581_v45 = vpop.f32.mrf.mxu2 }
 0x14e   :  { %v1569_v29 = vadd.f32 %v1568_v53, %v1556_v44  ;;  %v1596_v60 = vpop.f32.mrf.mxu0 }
 0x150   :  { %v1582_v46 = vadd.f32 %v1581_v45, %v1569_v29 }
 0x151   :  { %v1607_v49 = vpop.f32.mrf.mxu1 }
 0x152   :  { %v1595_v47 = vadd.f32 %v1594_v43, %v1582_v46 }
 0x154   :  { %v1608_v50 = vadd.f32 %v1607_v49, %v1595_v47 }
 0x155   :  { %v1570_v34 = vpop.f32.mrf.mxu3  ;;  %v1583_v39 = vpop.f32.mrf.mxu2 }
 0x156   :  { %vm1614_vm4 = vcmp.gt.f32.partialorder %v1608_v50, 0.0  ;;  %v1618_v35 = vmul.f32 0.2, %v1608_v50 }
 0x158   :  { %v1622_v51 = vsel %vm1614_vm4, %v1608_v50, %v1618_v35 }
 0x159   :  { %v1626_v54 = vpack.c.bf16 %v1622_v51, %v1622_v51  ;;  %v1609_v55 = vpop.f32.mrf.mxu1 }
 0x15b   :  { %2064 = vmatmul.bf16.vlgmr.msrb.gmra.mxu0 %v1626_v54 }
 0x16b   :  { %2116 = vmatmul.bf16.vlgmr.msra.gmra.mxu0 %v1626_v54 }
 0x16d   :  { %v2026_v56 = vpop.f32.mrf.mxu3 }
 0x16e   :  { %v2027_v62 = vadd.f32 %v2026_v56, %v1693_v61 }
 0x175   :  { %v2028_v58 = vpop.f32.mrf.mxu3 }
 0x17f   :  { %v2039_v41 = vpop.f32.mrf.mxu1 }
 0x180   :  { %v2040_v63 = vadd.f32 %v2039_v41, %v2027_v62 }
 0x187   :  { %v2041_v1 = vpop.f32.mrf.mxu1 }
 0x18d   :  { %v2078_v42 = vpop.f32.mrf.mxu3 }
 0x18e   :  { %v2079_v3 = vadd.f32 %v2078_v42, %v1694_v2 }
 0x18f   :  { %v2091_v5 = vpop.f32.mrf.mxu1 }
 0x190   :  { %v2092_v6 = vadd.f32 %v2091_v5, %v2079_v3 }
 0x195   :  { %v2080_v0 = vpop.f32.mrf.mxu3 }
 0x197   :  { %v2093_v7 = vpop.f32.mrf.mxu1 }
 0x1ba   :  { %v2052_v8 = vpop.f32.mrf.mxu2 }
 0x1bb   :  { %v2053_v15 = vadd.f32 %v2052_v8, %v2040_v63 }
 0x1c2   :  { %v2054_v10 = vpop.f32.mrf.mxu2 }
 0x1ca   :  { %v2104_v12 = vpop.f32.mrf.mxu2 }
 0x1cb   :  { %v2105_v9 = vadd.f32 %v2104_v12, %v2092_v6 }
 0x1d2   :  { %v2106_v4 = vpop.f32.mrf.mxu2 }
 0x1d8   :  { %v2065_v57 = vpop.f32.mrf.mxu0 }
 0x1d9   :  { %v2066_v17 = vadd.f32 %v2065_v57, %v2053_v15 }
 0x1db   :  { %v2123_v21 = vmul.f32 0.2, %v2066_v17  ;;  %vm2121_vm5 = vcmp.gt.f32.partialorder %v2066_v17, 0.0 }
 0x1dd   :  { %v2125_v26 = vsel %vm2121_vm5, %v2066_v17, %v2123_v21 }
 0x1de   :  { %v2136_v28 = vmul.f32 %v2134_v24, %v2125_v26 }
 0x1e0   :  { %v2067_v48 = vpop.f32.mrf.mxu0 }
 0x1e8   :  { %v2117_v22 = vpop.f32.mrf.mxu0 }
 0x1e9   :  { %v2118_v23 = vadd.f32 %v2117_v22, %v2105_v9 }
 0x1eb   :  { %vm2122_vm6 = vcmp.gt.f32.partialorder %v2118_v23, 0.0  ;;  %v2124_v25 = vmul.f32 0.2, %v2118_v23 }
 0x1ed   :  { %v2126_v27 = vsel %vm2122_vm6, %v2118_v23, %v2124_v25 }
 0x1ee   :  { %v2137_v30 = vmul.f32 %v2135_v11, %v2126_v27 }
 0x1f0   :  { %v2119_v31 = vpop.f32.mrf.mxu0  ;;  %v2138_v32 = vadd.f32 %v2137_v30, %v2136_v28 }
 0x1f2   :  { %2139 = vadd.xlane.f32.xlu0 %v2138_v32 }
 0x265   :  { %v2140_v36 = vpop.xlane.xlu0 %2139 }
 0x266   :  { %v2145_v19 = vadd.f32 %v3476_v33, %v2140_v36 }
 0x268   :  { %v3215_v37 = vmul.f32 -1.442695, %v2145_v19 }
 0x26a   :  { %3477 = vpow2.f32 %v3215_v37 }
 0x270   :  { %v3478_v38 = vpop.eup %3477 }
 0x271   :  { %v2149_v40 = vadd.f32 1.0, %v3478_v38 }
 0x273   :  { %3479 = vrcp.f32 %v2149_v40  ;;  %v2161_v53 = vand.u32 2147483648, %v2149_v40  ;;  %v2159_v45 = vand.u32 2147483647, %v2149_v40  ;;  %vm2155_vm8 = vweird.f32 %v2149_v40 }
 0x275   :  { %v2162_v60 = vor.u32 1.1754944e-38, %v2161_v53  ;;  %vm2160_vm11 = vcmp.eq.f32.partialorder %v2159_v45, 8.507059e+37 }
 0x279   :  { %v3480_v43 = vpop.eup %3479 }
 0x27a   :  { %v2151_v44 = vmul.f32 %v3480_v43, %v2149_v40  ;;  %vm2156_vm7 = vweird.f32 %v3480_v43 }
 0x27b   :  { %vm2157_vm9 = vmor %vm2155_vm8, %vm2156_vm7 }
 0x27c   :  { %v2152_v52 = vsub.f32 1.0, %v2151_v44 }
 0x27e   :  { %v2153_v29 = vmul.f32 %v3480_v43, %v2152_v52 }
 0x280   :  { %v2154_v46 = vadd.f32 %v3480_v43, %v2153_v29 }
 0x282   :  { %v2158_v47 = vsel %vm2157_vm9, %v3480_v43, %v2154_v46 }
 0x283   :  { %v2163_v49 = vsel %vm2160_vm11, %v2162_v60, %v2158_v47 }
 0x284   :  { %2166 = vst.msk [vmem:[%s5192_s7] sm:$0xff] %vm2165_vm10, %v2163_v49 }

</bundles_post_ra>
